<compile_context>
chip_gen: v7x
topology: tpu7x:2x2x1
jax: 0.10.0
libtpu: 0.0.40
codegen_flags: <defaults>
</compile_context>

<pallas_src>
import functools
import math

import jax
import jax.numpy as jnp
from jax.experimental import pallas as pl
from jax.experimental.pallas import tpu as pltpu

LANE = 128


def _round_up(x: int, m: int) -> int:
    return (x + m - 1) // m * m


# ----------------------------------------------------------------------------
# Kernel: one grid step = `block_b` whole (padded) sequences.
# ----------------------------------------------------------------------------
def _encoder_layer_kernel(
    src_ref,
    g_attn_ref, b_attn_ref,          # LayerNorm (attn)
    wq_ref, bq_ref,                  # Q projection  (Ep, H*Dp)   [scale folded in]
    wk_ref, bk_ref,                  # K projection
    wv_ref, bv_ref,                  # V projection
    wo_ref, bo_ref,                  # output projection (H, Dp, Ep)
    g_ffn_ref, b_ffn_ref,            # LayerNorm (ffn)
    w1_ref, b1_ref,                  # FFN linear 1 (Ep, Mp)
    w2_ref, b2_ref,                  # FFN linear 2 (Mp, Ep)
    out_ref,
    *,
    n_heads: int,
    d_pad: int,
    seq_pad: int,
    seq_true: int,
    block_b: int,
    e_true: int,
    e_pad: int,
    attn_eps: float,
    ffn_eps: float,
    mm_dtype,
    ffn_chunk: int,
):
    f32 = jnp.float32
    n_rows = block_b * seq_pad
    inv_e = 1.0 / e_true
    lane_pad = e_pad - e_true

    src = src_ref[...].astype(f32)                       # (n_rows, Ep), pad lanes = 0

    def layernorm(x, gamma, beta, eps):
        # Padded lanes of x are zero.  Centered variance with an exact correction
        # for the (Ep - E) zero lanes (each contributes mu^2 to sum((x-mu)^2)).
        mu = jnp.sum(x, axis=-1, keepdims=True) * inv_e
        d = x - mu
        ssq = jnp.sum(d * d, axis=-1, keepdims=True)
        if lane_pad:
            ssq = ssq - lane_pad * (mu * mu)
        var = jnp.maximum(ssq * inv_e, 0.0)
        # gamma/beta are zero-padded, so padded lanes of the result stay zero.
        return d * jax.lax.rsqrt(var + eps) * gamma + beta

    # ---- pre-norm + multi-head self-attention (q_idx=None -> q == x) --------
    x = layernorm(src, g_attn_ref[...], b_attn_ref[...], attn_eps)
    xm = x.astype(mm_dtype)

    # 1/sqrt(d_qkv) already folded into wq/bq in the wrapper.
    q = (jnp.dot(xm, wq_ref[...], preferred_element_type=f32) + bq_ref[...]).astype(mm_dtype)
    k = (jnp.dot(xm, wk_ref[...], preferred_element_type=f32) + bk_ref[...]).astype(mm_dtype)
    v = (jnp.dot(xm, wv_ref[...], preferred_element_type=f32) + bv_ref[...]).astype(mm_dtype)

    def to_heads(t):
        # (n_rows, H*Dp) [already mm_dtype] -> (H*block_b, S, Dp).
        th = jnp.stack([t[:, h * d_pad:(h + 1) * d_pad] for h in range(n_heads)], axis=0)
        return th.reshape(n_heads * block_b, seq_pad, d_pad)

    qh, kh, vh = to_heads(q), to_heads(k), to_heads(v)

    # Batched QK^T (no explicit transpose; contracting dims fed directly).
    s = jnp.einsum("bqd,bkd->bqk", qh, kh, preferred_element_type=f32)
    if seq_pad > seq_true:
        kidx = jax.lax.broadcasted_iota(jnp.int32, (1, 1, seq_pad), 2)
        s = s + jnp.where(kidx < seq_true, 0.0, -1e30).astype(f32)  # mask padded keys
    s = s - jnp.max(s, axis=-1, keepdims=True)
    p = jnp.exp(s)
    # EUP reciprocal instead of a VALU divide.
    p = p * pl.reciprocal(jnp.sum(p, axis=-1, keepdims=True), approx=True)

    ctx = jnp.einsum("bqk,bkd->bqd", p.astype(mm_dtype), vh,
                     preferred_element_type=f32)          # (H*block_b, S, Dp)

    # Output projection as a head-batched einsum against wo (H, Dp, Ep):
    # no lane concatenation of heads, just a cheap leading-axis reduction.
    ctx_h = ctx.reshape(n_heads, n_rows, d_pad).astype(mm_dtype)
    attn_h = jnp.einsum("hrd,hde->hre", ctx_h, wo_ref[...],
                        preferred_element_type=f32)       # (H, n_rows, Ep)
    attn_out = jnp.sum(attn_h, axis=0) + bo_ref[...]

    # TODO(synk): dropout_p only applies in training mode; eval forward is identity.
    x_res = src + attn_out                                # residual 1

    # ---- pre-norm + FFN (mlp_dim chunked, f32 accumulator) -------------------
    y = layernorm(x_res, g_ffn_ref[...], b_ffn_ref[...], ffn_eps)
    ym = y.astype(mm_dtype)

    m_pad = w1_ref.shape[1]
    acc = x_res + b2_ref[...]                             # residual 2 + final bias
    for c0 in range(0, m_pad, ffn_chunk):                 # static, unrolled
        c1 = min(c0 + ffn_chunk, m_pad)
        h1 = jnp.dot(ym, w1_ref[:, c0:c1], preferred_element_type=f32) + b1_ref[:, c0:c1]
        h1 = jnp.maximum(h1, 0.0)                         # ReLU
        acc = acc + jnp.dot(h1.astype(mm_dtype), w2_ref[c0:c1, :],
                            preferred_element_type=f32)

    out_ref[...] = acc.astype(out_ref.dtype)


# ----------------------------------------------------------------------------
# Wrapper: pads lanes/rows, folds the attention scale, builds grid/specs.
# ----------------------------------------------------------------------------
def tf_encoder_layer(src, params, *, n_heads, d_qkv, attn_eps, ffn_eps,
                     block_b=None, matmul_dtype=jnp.bfloat16):
    B, S, E = src.shape
    M = params["w1"].shape[1]
    f32 = jnp.float32
    mm_item = jnp.dtype(matmul_dtype).itemsize

    Ep = _round_up(E, LANE)
    Mp = _round_up(M, LANE)
    # Per-head width: no 128-lane blowup for small heads; Mosaic masks the short
    # MXU contraction.  Heads >= 128 wide stay 128-aligned.
    Dp = _round_up(d_qkv, LANE) if d_qkv >= LANE else _round_up(d_qkv, 8)
    HDp = n_heads * Dp

    # Pad S to the sublane granule of the matmul dtype so head reshapes stay
    # tile-aligned; padded keys are masked inside the kernel.
    s_align = max(8, 32 // mm_item)
    S_pad = _round_up(S, s_align)

    # ---- block sizing --------------------------------------------------------
    if block_b is None:
        # ~512-row (256-multiple) LHS tiles for v6e/v7x 256x256 MXUs; also
        # amortises the ~0.35us per-grid-step overhead.
        block_b = max(1, 512 // S_pad)
    block_b = max(1, min(block_b, B))
    # Keep >= 2 grid steps (when B allows) so both v7x TensorCores get work.
    while block_b > 1 and -(-B // block_b) < 2:
        block_b = -(-block_b // 2)
    B_pad = _round_up(B, block_b)            # pad B instead of degrading block_b
    n_rows = block_b * S_pad
    grid = (B_pad // block_b,)

    scale = 1.0 / math.sqrt(d_qkv)

    def lane_pad(a, width):
        a = jnp.asarray(a, f32)
        pad = width - a.shape[-1]
        return a if pad == 0 else jnp.pad(a, ((0, 0), (0, pad)))

    def pad_head_w(w, s=1.0):       # (E, H*d_qkv) -> (Ep, H*Dp), per-head packed
        w3 = jnp.zeros((Ep, n_heads, Dp), f32)
        w3 = w3.at[:E, :, :d_qkv].set(jnp.asarray(w, f32).reshape(E, n_heads, d_qkv) * s)
        return w3.reshape(Ep, HDp).astype(matmul_dtype)

    def pad_head_b(b, s=1.0):       # (1, H*d_qkv) -> (1, H*Dp), stays f32
        b3 = jnp.zeros((1, n_heads, Dp), f32)
        b3 = b3.at[:, :, :d_qkv].set(jnp.asarray(b, f32).reshape(1, n_heads, d_qkv) * s)
        return b3.reshape(1, HDp)

    def pad_out_w(w):               # (H*d_qkv, E) -> (H, Dp, Ep)
        w3 = jnp.zeros((n_heads, Dp, Ep), f32)
        w3 = w3.at[:, :d_qkv, :E].set(jnp.asarray(w, f32).reshape(n_heads, d_qkv, E))
        return w3.astype(matmul_dtype)

    def pad_plain_w(w, r, c):
        wp = jnp.zeros((r, c), f32).at[:w.shape[0], :w.shape[1]].set(jnp.asarray(w, f32))
        return wp.astype(matmul_dtype)

    src_p = jnp.pad(jnp.asarray(src, f32),
                    ((0, B_pad - B), (0, S_pad - S), (0, Ep - E)))
    src_rows = src_p.reshape(B_pad * S_pad, Ep)          # lane-dense rows

    inputs = (
        src_rows,
        lane_pad(params["g_attn"], Ep), lane_pad(params["b_attn"], Ep),
        pad_head_w(params["wq"], scale), pad_head_b(params["bq"], scale),
        pad_head_w(params["wk"]), pad_head_b(params["bk"]),
        pad_head_w(params["wv"]), pad_head_b(params["bv"]),
        pad_out_w(params["wo"]), lane_pad(params["bo"], Ep),
        lane_pad(params["g_ffn"], Ep), lane_pad(params["b_ffn"], Ep),
        pad_plain_w(params["w1"], Ep, Mp), lane_pad(params["b1"], Mp),
        pad_plain_w(params["w2"], Mp, Ep), lane_pad(params["b2"], Ep),
    )

    ffn_chunk = min(Mp, 4 * LANE)   # <=512 live lanes of the FFN intermediate
    # TODO(synk): at very large E/M on v7x, additionally move the FFN K-dim onto
    # an 'arbitrary' grid axis so only one (Ep, tk)/(tk, Ep) weight tile is resident.

    kernel = functools.partial(
        _encoder_layer_kernel,
        n_heads=n_heads, d_pad=Dp, seq_pad=S_pad, seq_true=S,
        block_b=block_b, e_true=E, e_pad=Ep,
        attn_eps=attn_eps, ffn_eps=ffn_eps, mm_dtype=matmul_dtype,
        ffn_chunk=ffn_chunk,
    )

    row_spec = pl.BlockSpec((n_rows, Ep), lambda i: (i, 0))

    # ---- VMEM budget: single-buffered weights + double-buffered row I/O + acts
    weight_bytes = sum(int(a.size) * a.dtype.itemsize for a in inputs[1:])
    row_block_bytes = n_rows * Ep * 4
    act_bytes = (
        6 * n_rows * Ep * 4
        + 3 * n_rows * HDp * (4 + mm_item)
        + 2 * n_heads * block_b * S_pad * S_pad * 4
        + 4 * n_heads * block_b * S_pad * Dp * (4 + mm_item)
        + n_heads * n_rows * Ep * 4
        + n_rows * ffn_chunk * (4 + mm_item)
    )
    vmem_need = weight_bytes + 2 * 2 * row_block_bytes + act_bytes
    vmem_limit = int(max(16 << 20, min(100 << 20, 1.3 * vmem_need)))

    flops = (6 * n_rows * Ep * HDp
             + 4 * n_heads * block_b * S_pad * S_pad * Dp
             + 2 * n_rows * HDp * Ep
             + 4 * n_rows * Ep * Mp) * grid[0]
    transcendentals = B_pad * n_heads * S_pad * S_pad
    bytes_accessed = sum(int(a.size) * a.dtype.itemsize for a in inputs)
    bytes_accessed += B_pad * S_pad * Ep * jnp.dtype(src.dtype).itemsize

    compiler_params = pltpu.CompilerParams(
        dimension_semantics=("parallel",), vmem_limit_bytes=vmem_limit)
    cost = pl.CostEstimate(flops=int(flops), transcendentals=int(transcendentals),
                           bytes_accessed=int(bytes_accessed))

    def build(weight_buffers):
        def wspec(shape):
            # Grid-invariant weights: constant block index (re-used, never
            # re-fetched); single buffer halves resident weight VMEM.
            if weight_buffers is None:
                return pl.BlockSpec(shape, lambda i: (0,) * len(shape))
            return pl.BlockSpec(shape, lambda i: (0,) * len(shape),
                                pipeline_mode=pl.Buffered(weight_buffers))

        grid_spec = pltpu.PrefetchScalarGridSpec(
            num_scalar_prefetch=0, grid=grid,
            in_specs=[
                row_spec,
                wspec((1, Ep)), wspec((1, Ep)),
                wspec((Ep, HDp)), wspec((1, HDp)),
                wspec((Ep, HDp)), wspec((1, HDp)),
                wspec((Ep, HDp)), wspec((1, HDp)),
                wspec((n_heads, Dp, Ep)), wspec((1, Ep)),
                wspec((1, Ep)), wspec((1, Ep)),
                wspec((Ep, Mp)), wspec((1, Mp)),
                wspec((Mp, Ep)), wspec((1, Ep)),
            ],
            out_specs=row_spec,
        )
        return pl.pallas_call(
            kernel,
            out_shape=jax.ShapeDtypeStruct((B_pad * S_pad, Ep), src.dtype),
            grid_spec=grid_spec,
            compiler_params=compiler_params,
            cost_estimate=cost,
        )

    try:
        out_rows = build(1)(*inputs)
    except Exception:
        # Fallback for Pallas versions that reject single-buffered pipeline_mode.
        out_rows = build(None)(*inputs)

    return out_rows.reshape(B_pad, S_pad, Ep)[:B, :S, :E]


# ----------------------------------------------------------------------------
# Pure-JAX reference (same math, unpadded) for the correctness check.
# ----------------------------------------------------------------------------
def reference(src, params, *, n_heads, d_qkv, attn_eps, ffn_eps):
    def ln(x, g, b, eps):
        mu = jnp.mean(x, axis=-1, keepdims=True)
        var = jnp.mean((x - mu) ** 2, axis=-1, keepdims=True)
        return (x - mu) * jax.lax.rsqrt(var + eps) * g + b

    x = ln(src, params["g_attn"], params["b_attn"], attn_eps)
    q = x @ params["wq"] + params["bq"]
    k = x @ params["wk"] + params["bk"]
    v = x @ params["wv"] + params["bv"]
    B, S, _ = src.shape
    q = q.reshape(B, S, n_heads, d_qkv).transpose(0, 2, 1, 3)
    k = k.reshape(B, S, n_heads, d_qkv).transpose(0, 2, 1, 3)
    v = v.reshape(B, S, n_heads, d_qkv).transpose(0, 2, 1, 3)
    s = jnp.einsum("bhqd,bhkd->bhqk", q, k) / math.sqrt(d_qkv)
    p = jax.nn.softmax(s, axis=-1)
    ctx = jnp.einsum("bhqk,bhkd->bhqd", p, v).transpose(0, 2, 1, 3).reshape(B, S, -1)
    attn = ctx @ params["wo"] + params["bo"]
    x = src + attn
    y = ln(x, params["g_ffn"], params["b_ffn"], ffn_eps)
    ffn = jnp.maximum(y @ params["w1"] + params["b1"], 0.0) @ params["w2"] + params["b2"]
    return x + ffn


# ----------------------------------------------------------------------------
# Main
# ----------------------------------------------------------------------------
if __name__ == "__main__":
    B, S, E = 2, 8, 32
    n_heads, mlp_dim = 4, 64
    d_qkv = E // n_heads
    HD = n_heads * d_qkv
    attn_eps = ffn_eps = 1e-5

    key = jax.random.PRNGKey(0)
    ks = jax.random.split(key, 13)
    w = 0.1
    params = {
        "g_attn": jnp.ones((1, E), jnp.float32),
        "b_attn": jnp.zeros((1, E), jnp.float32),
        "wq": w * jax.random.normal(ks[0], (E, HD), jnp.float32),
        "bq": w * jax.random.normal(ks[1], (1, HD), jnp.float32),
        "wk": w * jax.random.normal(ks[2], (E, HD), jnp.float32),
        "bk": w * jax.random.normal(ks[3], (1, HD), jnp.float32),
        "wv": w * jax.random.normal(ks[4], (E, HD), jnp.float32),
        "bv": w * jax.random.normal(ks[5], (1, HD), jnp.float32),
        "wo": w * jax.random.normal(ks[6], (HD, E), jnp.float32),
        "bo": w * jax.random.normal(ks[7], (1, E), jnp.float32),
        "g_ffn": jnp.ones((1, E), jnp.float32),
        "b_ffn": jnp.zeros((1, E), jnp.float32),
        "w1": w * jax.random.normal(ks[8], (E, mlp_dim), jnp.float32),
        "b1": w * jax.random.normal(ks[9], (1, mlp_dim), jnp.float32),
        "w2": w * jax.random.normal(ks[10], (mlp_dim, E), jnp.float32),
        "b2": w * jax.random.normal(ks[11], (1, E), jnp.float32),
    }
    src = jax.random.normal(ks[12], (B, S, E), jnp.float32)

    ref = reference(src, params, n_heads=n_heads, d_qkv=d_qkv,
                    attn_eps=attn_eps, ffn_eps=ffn_eps)

    # f32 matmul operands: tight-ish tolerance (approx reciprocal in softmax).
    out_f32 = tf_encoder_layer(src, params, n_heads=n_heads, d_qkv=d_qkv,
                               attn_eps=attn_eps, ffn_eps=ffn_eps,
                               matmul_dtype=jnp.float32)
    out_f32 = jax.block_until_ready(out_f32)
    assert out_f32.shape == (B, S, E)
    assert jnp.allclose(out_f32, ref, atol=5e-3, rtol=5e-3), "f32 kernel mismatch"

    # bf16 matmul operands (production default, f32 accumulate): relaxed tolerance.
    out_bf16 = tf_encoder_layer(src, params, n_heads=n_heads, d_qkv=d_qkv,
                                attn_eps=attn_eps, ffn_eps=ffn_eps)
    out_bf16 = jax.block_until_ready(out_bf16)
    assert out_bf16.shape == (B, S, E)
    assert jnp.allclose(out_bf16, ref, atol=5e-2, rtol=5e-2), "bf16 kernel mismatch"

    print("KERNEL_OK")
</pallas_src>

<mosaic_0001>
module attributes {stable_mosaic.version = 11 : i64} {
  func.func @_encoder_layer_kernel(%arg0: i32, %arg1: memref<8x128xf32, #tpu.memory_space<vmem>>, %arg2: memref<1x128xf32, #tpu.memory_space<vmem>>, %arg3: memref<1x128xf32, #tpu.memory_space<vmem>>, %arg4: memref<128x32xf32, #tpu.memory_space<vmem>>, %arg5: memref<1x32xf32, #tpu.memory_space<vmem>>, %arg6: memref<128x32xf32, #tpu.memory_space<vmem>>, %arg7: memref<1x32xf32, #tpu.memory_space<vmem>>, %arg8: memref<128x32xf32, #tpu.memory_space<vmem>>, %arg9: memref<1x32xf32, #tpu.memory_space<vmem>>, %arg10: memref<4x8x128xf32, #tpu.memory_space<vmem>>, %arg11: memref<1x128xf32, #tpu.memory_space<vmem>>, %arg12: memref<1x128xf32, #tpu.memory_space<vmem>>, %arg13: memref<1x128xf32, #tpu.memory_space<vmem>>, %arg14: memref<128x128xf32, #tpu.memory_space<vmem>>, %arg15: memref<1x128xf32, #tpu.memory_space<vmem>>, %arg16: memref<128x128xf32, #tpu.memory_space<vmem>>, %arg17: memref<1x128xf32, #tpu.memory_space<vmem>>, %arg18: memref<8x128xf32, #tpu.memory_space<vmem>>) attributes {dimension_semantics = [#tpu.dimension_semantics<parallel>], iteration_bounds = array<i64: 2>, scalar_prefetch = 0 : i64, scratch_operands = 0 : i64, tpu.core_type = #tpu.core_type<tc>, window_params = [{transform_indices = @transform_0, window_bounds = array<i64: 8, 128>}, {pipeline_mode = #tpu.pipeline_mode<synchronous>, transform_indices = @transform_1, window_bounds = array<i64: 1, 128>}, {pipeline_mode = #tpu.pipeline_mode<synchronous>, transform_indices = @transform_2, window_bounds = array<i64: 1, 128>}, {pipeline_mode = #tpu.pipeline_mode<synchronous>, transform_indices = @transform_3, window_bounds = array<i64: 128, 32>}, {pipeline_mode = #tpu.pipeline_mode<synchronous>, transform_indices = @transform_4, window_bounds = array<i64: 1, 32>}, {pipeline_mode = #tpu.pipeline_mode<synchronous>, transform_indices = @transform_5, window_bounds = array<i64: 128, 32>}, {pipeline_mode = #tpu.pipeline_mode<synchronous>, transform_indices = @transform_6, window_bounds = array<i64: 1, 32>}, {pipeline_mode = #tpu.pipeline_mode<synchronous>, transform_indices = @transform_7, window_bounds = array<i64: 128, 32>}, {pipeline_mode = #tpu.pipeline_mode<synchronous>, transform_indices = @transform_8, window_bounds = array<i64: 1, 32>}, {pipeline_mode = #tpu.pipeline_mode<synchronous>, transform_indices = @transform_9, window_bounds = array<i64: 4, 8, 128>}, {pipeline_mode = #tpu.pipeline_mode<synchronous>, transform_indices = @transform_10, window_bounds = array<i64: 1, 128>}, {pipeline_mode = #tpu.pipeline_mode<synchronous>, transform_indices = @transform_11, window_bounds = array<i64: 1, 128>}, {pipeline_mode = #tpu.pipeline_mode<synchronous>, transform_indices = @transform_12, window_bounds = array<i64: 1, 128>}, {pipeline_mode = #tpu.pipeline_mode<synchronous>, transform_indices = @transform_13, window_bounds = array<i64: 128, 128>}, {pipeline_mode = #tpu.pipeline_mode<synchronous>, transform_indices = @transform_14, window_bounds = array<i64: 1, 128>}, {pipeline_mode = #tpu.pipeline_mode<synchronous>, transform_indices = @transform_15, window_bounds = array<i64: 128, 128>}, {pipeline_mode = #tpu.pipeline_mode<synchronous>, transform_indices = @transform_16, window_bounds = array<i64: 1, 128>}, {transform_indices = @transform_17, window_bounds = array<i64: 8, 128>}]} {
    %c0 = arith.constant 0 : index
    %c0_0 = arith.constant 0 : index
    %0 = vector.load %arg1[%c0, %c0_0] : memref<8x128xf32, #tpu.memory_space<vmem>>, vector<8x128xf32>
    %c0_1 = arith.constant 0 : index
    %c0_2 = arith.constant 0 : index
    %1 = vector.load %arg2[%c0_1, %c0_2] : memref<1x128xf32, #tpu.memory_space<vmem>>, vector<1x128xf32>
    %c0_3 = arith.constant 0 : index
    %c0_4 = arith.constant 0 : index
    %2 = vector.load %arg3[%c0_3, %c0_4] : memref<1x128xf32, #tpu.memory_space<vmem>>, vector<1x128xf32>
    %cst = arith.constant dense<0.000000e+00> : vector<8xf32>
    %3 = vector.multi_reduction <add>, %0, %cst [1] : vector<8x128xf32> to vector<8xf32>
    %4 = vector.shape_cast %3 : vector<8xf32> to vector<8x1xf32>
    %cst_5 = arith.constant 3.125000e-02 : f32
    %5 = vector.broadcast %cst_5 : f32 to vector<8x1xf32>
    %6 = arith.mulf %4, %5 : vector<8x1xf32>
    %7 = vector.broadcast %6 : vector<8x1xf32> to vector<8x128xf32>
    %8 = arith.subf %0, %7 : vector<8x128xf32>
    %9 = arith.mulf %8, %8 : vector<8x128xf32>
    %cst_6 = arith.constant dense<0.000000e+00> : vector<8xf32>
    %10 = vector.multi_reduction <add>, %9, %cst_6 [1] : vector<8x128xf32> to vector<8xf32>
    %11 = vector.shape_cast %10 : vector<8xf32> to vector<8x1xf32>
    %12 = arith.mulf %6, %6 : vector<8x1xf32>
    %cst_7 = arith.constant 9.600000e+01 : f32
    %13 = vector.broadcast %cst_7 : f32 to vector<8x1xf32>
    %14 = arith.mulf %13, %12 : vector<8x1xf32>
    %15 = arith.subf %11, %14 : vector<8x1xf32>
    %cst_8 = arith.constant 3.125000e-02 : f32
    %16 = vector.broadcast %cst_8 : f32 to vector<8x1xf32>
    %17 = arith.mulf %15, %16 : vector<8x1xf32>
    %cst_9 = arith.constant 0.000000e+00 : f32
    %18 = vector.broadcast %cst_9 : f32 to vector<8x1xf32>
    %19 = arith.maximumf %17, %18 : vector<8x1xf32>
    %cst_10 = arith.constant 9.99999974E-6 : f32
    %20 = vector.broadcast %cst_10 : f32 to vector<8x1xf32>
    %21 = arith.addf %19, %20 : vector<8x1xf32>
    %22 = math.rsqrt %21 : vector<8x1xf32>
    %23 = vector.broadcast %22 : vector<8x1xf32> to vector<8x128xf32>
    %24 = arith.mulf %8, %23 : vector<8x128xf32>
    %25 = vector.broadcast %1 : vector<1x128xf32> to vector<8x128xf32>
    %26 = arith.mulf %24, %25 : vector<8x128xf32>
    %27 = vector.broadcast %2 : vector<1x128xf32> to vector<8x128xf32>
    %28 = arith.addf %26, %27 : vector<8x128xf32>
    %c0_11 = arith.constant 0 : index
    %c0_12 = arith.constant 0 : index
    %29 = vector.load %arg4[%c0_11, %c0_12] : memref<128x32xf32, #tpu.memory_space<vmem>>, vector<128x32xf32>
    %cst_13 = arith.constant dense<0.000000e+00> : vector<8x32xf32>
    %30 = tpu.matmul %28, %29, %cst_13 {dimension_numbers = #tpu.dot_dimension_numbers<[1], [0], [0], [1], [0, 0, 1, 1], [], []>} : vector<8x128xf32>, vector<128x32xf32>, vector<8x32xf32> -> vector<8x32xf32>
    %c0_14 = arith.constant 0 : index
    %c0_15 = arith.constant 0 : index
    %31 = vector.load %arg5[%c0_14, %c0_15] : memref<1x32xf32, #tpu.memory_space<vmem>>, vector<1x32xf32>
    %32 = vector.broadcast %31 : vector<1x32xf32> to vector<8x32xf32>
    %33 = arith.addf %30, %32 : vector<8x32xf32>
    %c0_16 = arith.constant 0 : index
    %c0_17 = arith.constant 0 : index
    %34 = vector.load %arg6[%c0_16, %c0_17] : memref<128x32xf32, #tpu.memory_space<vmem>>, vector<128x32xf32>
    %cst_18 = arith.constant dense<0.000000e+00> : vector<8x32xf32>
    %35 = tpu.matmul %28, %34, %cst_18 {dimension_numbers = #tpu.dot_dimension_numbers<[1], [0], [0], [1], [0, 0, 1, 1], [], []>} : vector<8x128xf32>, vector<128x32xf32>, vector<8x32xf32> -> vector<8x32xf32>
    %c0_19 = arith.constant 0 : index
    %c0_20 = arith.constant 0 : index
    %36 = vector.load %arg7[%c0_19, %c0_20] : memref<1x32xf32, #tpu.memory_space<vmem>>, vector<1x32xf32>
    %37 = vector.broadcast %36 : vector<1x32xf32> to vector<8x32xf32>
    %38 = arith.addf %35, %37 : vector<8x32xf32>
    %c0_21 = arith.constant 0 : index
    %c0_22 = arith.constant 0 : index
    %39 = vector.load %arg8[%c0_21, %c0_22] : memref<128x32xf32, #tpu.memory_space<vmem>>, vector<128x32xf32>
    %cst_23 = arith.constant dense<0.000000e+00> : vector<8x32xf32>
    %40 = tpu.matmul %28, %39, %cst_23 {dimension_numbers = #tpu.dot_dimension_numbers<[1], [0], [0], [1], [0, 0, 1, 1], [], []>} : vector<8x128xf32>, vector<128x32xf32>, vector<8x32xf32> -> vector<8x32xf32>
    %c0_24 = arith.constant 0 : index
    %c0_25 = arith.constant 0 : index
    %41 = vector.load %arg9[%c0_24, %c0_25] : memref<1x32xf32, #tpu.memory_space<vmem>>, vector<1x32xf32>
    %42 = vector.broadcast %41 : vector<1x32xf32> to vector<8x32xf32>
    %43 = arith.addf %40, %42 : vector<8x32xf32>
    %44 = vector.extract_strided_slice %33 {offsets = [0, 0], sizes = [8, 8], strides = [1, 1]} : vector<8x32xf32> to vector<8x8xf32>
    %45 = vector.extract_strided_slice %33 {offsets = [0, 8], sizes = [8, 8], strides = [1, 1]} : vector<8x32xf32> to vector<8x8xf32>
    %46 = vector.extract_strided_slice %33 {offsets = [0, 16], sizes = [8, 8], strides = [1, 1]} : vector<8x32xf32> to vector<8x8xf32>
    %47 = vector.extract_strided_slice %33 {offsets = [0, 24], sizes = [8, 8], strides = [1, 1]} : vector<8x32xf32> to vector<8x8xf32>
    %48 = vector.shape_cast %44 : vector<8x8xf32> to vector<1x8x8xf32>
    %49 = vector.shape_cast %45 : vector<8x8xf32> to vector<1x8x8xf32>
    %50 = vector.shape_cast %46 : vector<8x8xf32> to vector<1x8x8xf32>
    %51 = vector.shape_cast %47 : vector<8x8xf32> to vector<1x8x8xf32>
    %52 = tpu.concatenate %48, %49, %50, %51 in 0 : vector<1x8x8xf32>, vector<1x8x8xf32>, vector<1x8x8xf32>, vector<1x8x8xf32> -> vector<4x8x8xf32>
    %53 = vector.extract_strided_slice %38 {offsets = [0, 0], sizes = [8, 8], strides = [1, 1]} : vector<8x32xf32> to vector<8x8xf32>
    %54 = vector.extract_strided_slice %38 {offsets = [0, 8], sizes = [8, 8], strides = [1, 1]} : vector<8x32xf32> to vector<8x8xf32>
    %55 = vector.extract_strided_slice %38 {offsets = [0, 16], sizes = [8, 8], strides = [1, 1]} : vector<8x32xf32> to vector<8x8xf32>
    %56 = vector.extract_strided_slice %38 {offsets = [0, 24], sizes = [8, 8], strides = [1, 1]} : vector<8x32xf32> to vector<8x8xf32>
    %57 = vector.shape_cast %53 : vector<8x8xf32> to vector<1x8x8xf32>
    %58 = vector.shape_cast %54 : vector<8x8xf32> to vector<1x8x8xf32>
    %59 = vector.shape_cast %55 : vector<8x8xf32> to vector<1x8x8xf32>
    %60 = vector.shape_cast %56 : vector<8x8xf32> to vector<1x8x8xf32>
    %61 = tpu.concatenate %57, %58, %59, %60 in 0 : vector<1x8x8xf32>, vector<1x8x8xf32>, vector<1x8x8xf32>, vector<1x8x8xf32> -> vector<4x8x8xf32>
    %62 = vector.extract_strided_slice %43 {offsets = [0, 0], sizes = [8, 8], strides = [1, 1]} : vector<8x32xf32> to vector<8x8xf32>
    %63 = vector.extract_strided_slice %43 {offsets = [0, 8], sizes = [8, 8], strides = [1, 1]} : vector<8x32xf32> to vector<8x8xf32>
    %64 = vector.extract_strided_slice %43 {offsets = [0, 16], sizes = [8, 8], strides = [1, 1]} : vector<8x32xf32> to vector<8x8xf32>
    %65 = vector.extract_strided_slice %43 {offsets = [0, 24], sizes = [8, 8], strides = [1, 1]} : vector<8x32xf32> to vector<8x8xf32>
    %66 = vector.shape_cast %62 : vector<8x8xf32> to vector<1x8x8xf32>
    %67 = vector.shape_cast %63 : vector<8x8xf32> to vector<1x8x8xf32>
    %68 = vector.shape_cast %64 : vector<8x8xf32> to vector<1x8x8xf32>
    %69 = vector.shape_cast %65 : vector<8x8xf32> to vector<1x8x8xf32>
    %70 = tpu.concatenate %66, %67, %68, %69 in 0 : vector<1x8x8xf32>, vector<1x8x8xf32>, vector<1x8x8xf32>, vector<1x8x8xf32> -> vector<4x8x8xf32>
    "tpu.trace_start"() <{level = 10 : i32, message = "bqd,bkd->bqk"}> : () -> ()
    %cst_26 = arith.constant dense<0.000000e+00> : vector<4x8x8xf32>
    %71 = tpu.matmul %52, %61, %cst_26 {dimension_numbers = #tpu.dot_dimension_numbers<[2], [2], [1], [1], [0, 0, 0, 1, 1, 1], [0], [0]>} : vector<4x8x8xf32>, vector<4x8x8xf32>, vector<4x8x8xf32> -> vector<4x8x8xf32>
    "tpu.trace_stop"() : () -> ()
    %cst_27 = arith.constant dense<0xFF800000> : vector<4x8xf32>
    %72 = vector.multi_reduction <maximumf>, %71, %cst_27 [2] : vector<4x8x8xf32> to vector<4x8xf32>
    %73 = vector.shape_cast %72 : vector<4x8xf32> to vector<4x8x1xf32>
    %74 = vector.broadcast %73 : vector<4x8x1xf32> to vector<4x8x8xf32>
    %75 = arith.subf %71, %74 : vector<4x8x8xf32>
    %76 = math.exp %75 : vector<4x8x8xf32>
    %cst_28 = arith.constant dense<0.000000e+00> : vector<4x8xf32>
    %77 = vector.multi_reduction <add>, %76, %cst_28 [2] : vector<4x8x8xf32> to vector<4x8xf32>
    %78 = vector.shape_cast %77 : vector<4x8xf32> to vector<4x8x1xf32>
    %79 = tpu.reciprocal %78 {approx = true} : vector<4x8x1xf32> -> vector<4x8x1xf32>
    %80 = vector.broadcast %79 : vector<4x8x1xf32> to vector<4x8x8xf32>
    %81 = arith.mulf %76, %80 : vector<4x8x8xf32>
    "tpu.trace_start"() <{level = 10 : i32, message = "bqk,bkd->bqd"}> : () -> ()
    %cst_29 = arith.constant dense<0.000000e+00> : vector<4x8x8xf32>
    %82 = tpu.matmul %81, %70, %cst_29 {dimension_numbers = #tpu.dot_dimension_numbers<[2], [1], [1], [2], [0, 0, 0, 1, 1, 2], [0], [0]>} : vector<4x8x8xf32>, vector<4x8x8xf32>, vector<4x8x8xf32> -> vector<4x8x8xf32>
    "tpu.trace_stop"() : () -> ()
    %c0_30 = arith.constant 0 : index
    %c0_31 = arith.constant 0 : index
    %c0_32 = arith.constant 0 : index
    %83 = vector.load %arg10[%c0_30, %c0_31, %c0_32] : memref<4x8x128xf32, #tpu.memory_space<vmem>>, vector<4x8x128xf32>
    "tpu.trace_start"() <{level = 10 : i32, message = "hrd,hde->hre"}> : () -> ()
    %cst_33 = arith.constant dense<0.000000e+00> : vector<4x8x128xf32>
    %84 = tpu.matmul %82, %83, %cst_33 {dimension_numbers = #tpu.dot_dimension_numbers<[2], [1], [1], [2], [0, 0, 0, 1, 1, 2], [0], [0]>} : vector<4x8x8xf32>, vector<4x8x128xf32>, vector<4x8x128xf32> -> vector<4x8x128xf32>
    "tpu.trace_stop"() : () -> ()
    %cst_34 = arith.constant dense<0.000000e+00> : vector<8x128xf32>
    %85 = vector.multi_reduction <add>, %84, %cst_34 [0] : vector<4x8x128xf32> to vector<8x128xf32>
    %c0_35 = arith.constant 0 : index
    %c0_36 = arith.constant 0 : index
    %86 = vector.load %arg11[%c0_35, %c0_36] : memref<1x128xf32, #tpu.memory_space<vmem>>, vector<1x128xf32>
    %87 = vector.broadcast %86 : vector<1x128xf32> to vector<8x128xf32>
    %88 = arith.addf %85, %87 : vector<8x128xf32>
    %89 = arith.addf %0, %88 : vector<8x128xf32>
    %c0_37 = arith.constant 0 : index
    %c0_38 = arith.constant 0 : index
    %90 = vector.load %arg12[%c0_37, %c0_38] : memref<1x128xf32, #tpu.memory_space<vmem>>, vector<1x128xf32>
    %c0_39 = arith.constant 0 : index
    %c0_40 = arith.constant 0 : index
    %91 = vector.load %arg13[%c0_39, %c0_40] : memref<1x128xf32, #tpu.memory_space<vmem>>, vector<1x128xf32>
    %cst_41 = arith.constant dense<0.000000e+00> : vector<8xf32>
    %92 = vector.multi_reduction <add>, %89, %cst_41 [1] : vector<8x128xf32> to vector<8xf32>
    %93 = vector.shape_cast %92 : vector<8xf32> to vector<8x1xf32>
    %cst_42 = arith.constant 3.125000e-02 : f32
    %94 = vector.broadcast %cst_42 : f32 to vector<8x1xf32>
    %95 = arith.mulf %93, %94 : vector<8x1xf32>
    %96 = vector.broadcast %95 : vector<8x1xf32> to vector<8x128xf32>
    %97 = arith.subf %89, %96 : vector<8x128xf32>
    %98 = arith.mulf %97, %97 : vector<8x128xf32>
    %cst_43 = arith.constant dense<0.000000e+00> : vector<8xf32>
    %99 = vector.multi_reduction <add>, %98, %cst_43 [1] : vector<8x128xf32> to vector<8xf32>
    %100 = vector.shape_cast %99 : vector<8xf32> to vector<8x1xf32>
    %101 = arith.mulf %95, %95 : vector<8x1xf32>
    %cst_44 = arith.constant 9.600000e+01 : f32
    %102 = vector.broadcast %cst_44 : f32 to vector<8x1xf32>
    %103 = arith.mulf %102, %101 : vector<8x1xf32>
    %104 = arith.subf %100, %103 : vector<8x1xf32>
    %cst_45 = arith.constant 3.125000e-02 : f32
    %105 = vector.broadcast %cst_45 : f32 to vector<8x1xf32>
    %106 = arith.mulf %104, %105 : vector<8x1xf32>
    %cst_46 = arith.constant 0.000000e+00 : f32
    %107 = vector.broadcast %cst_46 : f32 to vector<8x1xf32>
    %108 = arith.maximumf %106, %107 : vector<8x1xf32>
    %cst_47 = arith.constant 9.99999974E-6 : f32
    %109 = vector.broadcast %cst_47 : f32 to vector<8x1xf32>
    %110 = arith.addf %108, %109 : vector<8x1xf32>
    %111 = math.rsqrt %110 : vector<8x1xf32>
    %112 = vector.broadcast %111 : vector<8x1xf32> to vector<8x128xf32>
    %113 = arith.mulf %97, %112 : vector<8x128xf32>
    %114 = vector.broadcast %90 : vector<1x128xf32> to vector<8x128xf32>
    %115 = arith.mulf %113, %114 : vector<8x128xf32>
    %116 = vector.broadcast %91 : vector<1x128xf32> to vector<8x128xf32>
    %117 = arith.addf %115, %116 : vector<8x128xf32>
    %c0_48 = arith.constant 0 : index
    %c0_49 = arith.constant 0 : index
    %118 = vector.load %arg17[%c0_48, %c0_49] : memref<1x128xf32, #tpu.memory_space<vmem>>, vector<1x128xf32>
    %119 = vector.broadcast %118 : vector<1x128xf32> to vector<8x128xf32>
    %120 = arith.addf %89, %119 : vector<8x128xf32>
    %c0_50 = arith.constant 0 : index
    %c0_51 = arith.constant 0 : index
    %121 = vector.load %arg14[%c0_50, %c0_51] : memref<128x128xf32, #tpu.memory_space<vmem>>, vector<128x128xf32>
    %cst_52 = arith.constant dense<0.000000e+00> : vector<8x128xf32>
    %122 = tpu.matmul %117, %121, %cst_52 {dimension_numbers = #tpu.dot_dimension_numbers<[1], [0], [0], [1], [0, 0, 1, 1], [], []>} : vector<8x128xf32>, vector<128x128xf32>, vector<8x128xf32> -> vector<8x128xf32>
    %c0_53 = arith.constant 0 : index
    %c0_54 = arith.constant 0 : index
    %123 = vector.load %arg15[%c0_53, %c0_54] : memref<1x128xf32, #tpu.memory_space<vmem>>, vector<1x128xf32>
    %124 = vector.broadcast %123 : vector<1x128xf32> to vector<8x128xf32>
    %125 = arith.addf %122, %124 : vector<8x128xf32>
    %cst_55 = arith.constant 0.000000e+00 : f32
    %126 = vector.broadcast %cst_55 : f32 to vector<8x128xf32>
    %127 = arith.maximumf %125, %126 : vector<8x128xf32>
    %c0_56 = arith.constant 0 : index
    %c0_57 = arith.constant 0 : index
    %128 = vector.load %arg16[%c0_56, %c0_57] : memref<128x128xf32, #tpu.memory_space<vmem>>, vector<128x128xf32>
    %cst_58 = arith.constant dense<0.000000e+00> : vector<8x128xf32>
    %129 = tpu.matmul %127, %128, %cst_58 {dimension_numbers = #tpu.dot_dimension_numbers<[1], [0], [0], [1], [0, 0, 1, 1], [], []>} : vector<8x128xf32>, vector<128x128xf32>, vector<8x128xf32> -> vector<8x128xf32>
    %130 = arith.addf %120, %129 : vector<8x128xf32>
    %c0_59 = arith.constant 0 : index
    %c0_60 = arith.constant 0 : index
    %131 = vector.load %arg18[%c0_59, %c0_60] : memref<8x128xf32, #tpu.memory_space<vmem>>, vector<8x128xf32>
    tpu.vector_store %arg18[%c0_59, %c0_60], %130 {strides = array<i32>} : memref<8x128xf32, #tpu.memory_space<vmem>>, vector<8x128xf32>,
    return
  }
  func.func @transform_0(%arg0: i32) -> (i32, i32) {
    %c0_i32 = arith.constant 0 : i32
    %c0_i32_0 = arith.constant 0 : i32
    return %arg0, %c0_i32 : i32, i32
  }
  func.func @transform_1(%arg0: i32) -> (i32, i32) {
    %c0_i32 = arith.constant 0 : i32
    %c0_i32_0 = arith.constant 0 : i32
    %c0_i32_1 = arith.constant 0 : i32
    return %c0_i32, %c0_i32_0 : i32, i32
  }
  func.func @transform_2(%arg0: i32) -> (i32, i32) {
    %c0_i32 = arith.constant 0 : i32
    %c0_i32_0 = arith.constant 0 : i32
    %c0_i32_1 = arith.constant 0 : i32
    return %c0_i32, %c0_i32_0 : i32, i32
  }
  func.func @transform_3(%arg0: i32) -> (i32, i32) {
    %c0_i32 = arith.constant 0 : i32
    %c0_i32_0 = arith.constant 0 : i32
    %c0_i32_1 = arith.constant 0 : i32
    return %c0_i32, %c0_i32_0 : i32, i32
  }
  func.func @transform_4(%arg0: i32) -> (i32, i32) {
    %c0_i32 = arith.constant 0 : i32
    %c0_i32_0 = arith.constant 0 : i32
    %c0_i32_1 = arith.constant 0 : i32
    return %c0_i32, %c0_i32_0 : i32, i32
  }
  func.func @transform_5(%arg0: i32) -> (i32, i32) {
    %c0_i32 = arith.constant 0 : i32
    %c0_i32_0 = arith.constant 0 : i32
    %c0_i32_1 = arith.constant 0 : i32
    return %c0_i32, %c0_i32_0 : i32, i32
  }
  func.func @transform_6(%arg0: i32) -> (i32, i32) {
    %c0_i32 = arith.constant 0 : i32
    %c0_i32_0 = arith.constant 0 : i32
    %c0_i32_1 = arith.constant 0 : i32
    return %c0_i32, %c0_i32_0 : i32, i32
  }
  func.func @transform_7(%arg0: i32) -> (i32, i32) {
    %c0_i32 = arith.constant 0 : i32
    %c0_i32_0 = arith.constant 0 : i32
    %c0_i32_1 = arith.constant 0 : i32
    return %c0_i32, %c0_i32_0 : i32, i32
  }
  func.func @transform_8(%arg0: i32) -> (i32, i32) {
    %c0_i32 = arith.constant 0 : i32
    %c0_i32_0 = arith.constant 0 : i32
    %c0_i32_1 = arith.constant 0 : i32
    return %c0_i32, %c0_i32_0 : i32, i32
  }
  func.func @transform_9(%arg0: i32) -> (i32, i32, i32) {
    %c0_i32 = arith.constant 0 : i32
    %c0_i32_0 = arith.constant 0 : i32
    %c0_i32_1 = arith.constant 0 : i32
    %c0_i32_2 = arith.constant 0 : i32
    return %c0_i32, %c0_i32_0, %c0_i32_1 : i32, i32, i32
  }
  func.func @transform_10(%arg0: i32) -> (i32, i32) {
    %c0_i32 = arith.constant 0 : i32
    %c0_i32_0 = arith.constant 0 : i32
    %c0_i32_1 = arith.constant 0 : i32
    return %c0_i32, %c0_i32_0 : i32, i32
  }
  func.func @transform_11(%arg0: i32) -> (i32, i32) {
    %c0_i32 = arith.constant 0 : i32
    %c0_i32_0 = arith.constant 0 : i32
    %c0_i32_1 = arith.constant 0 : i32
    return %c0_i32, %c0_i32_0 : i32, i32
  }
  func.func @transform_12(%arg0: i32) -> (i32, i32) {
    %c0_i32 = arith.constant 0 : i32
    %c0_i32_0 = arith.constant 0 : i32
    %c0_i32_1 = arith.constant 0 : i32
    return %c0_i32, %c0_i32_0 : i32, i32
  }
  func.func @transform_13(%arg0: i32) -> (i32, i32) {
    %c0_i32 = arith.constant 0 : i32
    %c0_i32_0 = arith.constant 0 : i32
    %c0_i32_1 = arith.constant 0 : i32
    return %c0_i32, %c0_i32_0 : i32, i32
  }
  func.func @transform_14(%arg0: i32) -> (i32, i32) {
    %c0_i32 = arith.constant 0 : i32
    %c0_i32_0 = arith.constant 0 : i32
    %c0_i32_1 = arith.constant 0 : i32
    return %c0_i32, %c0_i32_0 : i32, i32
  }
  func.func @transform_15(%arg0: i32) -> (i32, i32) {
    %c0_i32 = arith.constant 0 : i32
    %c0_i32_0 = arith.constant 0 : i32
    %c0_i32_1 = arith.constant 0 : i32
    return %c0_i32, %c0_i32_0 : i32, i32
  }
  func.func @transform_16(%arg0: i32) -> (i32, i32) {
    %c0_i32 = arith.constant 0 : i32
    %c0_i32_0 = arith.constant 0 : i32
    %c0_i32_1 = arith.constant 0 : i32
    return %c0_i32, %c0_i32_0 : i32, i32
  }
  func.func @transform_17(%arg0: i32) -> (i32, i32) {
    %c0_i32 = arith.constant 0 : i32
    %c0_i32_0 = arith.constant 0 : i32
    return %arg0, %c0_i32 : i32, i32
  }
}

module attributes {stable_mosaic.version = 11 : i64} {
  func.func @_encoder_layer_kernel(%arg0: i32, %arg1: memref<8x128xf32, #tpu.memory_space<vmem>>, %arg2: memref<1x128xf32, #tpu.memory_space<vmem>>, %arg3: memref<1x128xf32, #tpu.memory_space<vmem>>, %arg4: memref<128x32xf32, #tpu.memory_space<vmem>>, %arg5: memref<1x32xf32, #tpu.memory_space<vmem>>, %arg6: memref<128x32xf32, #tpu.memory_space<vmem>>, %arg7: memref<1x32xf32, #tpu.memory_space<vmem>>, %arg8: memref<128x32xf32, #tpu.memory_space<vmem>>, %arg9: memref<1x32xf32, #tpu.memory_space<vmem>>, %arg10: memref<4x8x128xf32, #tpu.memory_space<vmem>>, %arg11: memref<1x128xf32, #tpu.memory_space<vmem>>, %arg12: memref<1x128xf32, #tpu.memory_space<vmem>>, %arg13: memref<1x128xf32, #tpu.memory_space<vmem>>, %arg14: memref<128x128xf32, #tpu.memory_space<vmem>>, %arg15: memref<1x128xf32, #tpu.memory_space<vmem>>, %arg16: memref<128x128xf32, #tpu.memory_space<vmem>>, %arg17: memref<1x128xf32, #tpu.memory_space<vmem>>, %arg18: memref<8x128xf32, #tpu.memory_space<vmem>>) attributes {dimension_semantics = [#tpu.dimension_semantics<parallel>], iteration_bounds = array<i64: 2>, scalar_prefetch = 0 : i64, scratch_operands = 0 : i64, tpu.core_type = #tpu.core_type<tc>, window_params = [{transform_indices = @transform_0, window_bounds = array<i64: 8, 128>}, {pipeline_mode = #tpu.pipeline_mode<synchronous>, transform_indices = @transform_1, window_bounds = array<i64: 1, 128>}, {pipeline_mode = #tpu.pipeline_mode<synchronous>, transform_indices = @transform_2, window_bounds = array<i64: 1, 128>}, {pipeline_mode = #tpu.pipeline_mode<synchronous>, transform_indices = @transform_3, window_bounds = array<i64: 128, 32>}, {pipeline_mode = #tpu.pipeline_mode<synchronous>, transform_indices = @transform_4, window_bounds = array<i64: 1, 32>}, {pipeline_mode = #tpu.pipeline_mode<synchronous>, transform_indices = @transform_5, window_bounds = array<i64: 128, 32>}, {pipeline_mode = #tpu.pipeline_mode<synchronous>, transform_indices = @transform_6, window_bounds = array<i64: 1, 32>}, {pipeline_mode = #tpu.pipeline_mode<synchronous>, transform_indices = @transform_7, window_bounds = array<i64: 128, 32>}, {pipeline_mode = #tpu.pipeline_mode<synchronous>, transform_indices = @transform_8, window_bounds = array<i64: 1, 32>}, {pipeline_mode = #tpu.pipeline_mode<synchronous>, transform_indices = @transform_9, window_bounds = array<i64: 4, 8, 128>}, {pipeline_mode = #tpu.pipeline_mode<synchronous>, transform_indices = @transform_10, window_bounds = array<i64: 1, 128>}, {pipeline_mode = #tpu.pipeline_mode<synchronous>, transform_indices = @transform_11, window_bounds = array<i64: 1, 128>}, {pipeline_mode = #tpu.pipeline_mode<synchronous>, transform_indices = @transform_12, window_bounds = array<i64: 1, 128>}, {pipeline_mode = #tpu.pipeline_mode<synchronous>, transform_indices = @transform_13, window_bounds = array<i64: 128, 128>}, {pipeline_mode = #tpu.pipeline_mode<synchronous>, transform_indices = @transform_14, window_bounds = array<i64: 1, 128>}, {pipeline_mode = #tpu.pipeline_mode<synchronous>, transform_indices = @transform_15, window_bounds = array<i64: 128, 128>}, {pipeline_mode = #tpu.pipeline_mode<synchronous>, transform_indices = @transform_16, window_bounds = array<i64: 1, 128>}, {transform_indices = @transform_17, window_bounds = array<i64: 8, 128>}]} {
    %c0 = arith.constant 0 : index
    %c0_0 = arith.constant 0 : index
    %0 = vector.load %arg1[%c0, %c0_0] : memref<8x128xf32, #tpu.memory_space<vmem>>, vector<8x128xf32>
    %c0_1 = arith.constant 0 : index
    %c0_2 = arith.constant 0 : index
    %1 = vector.load %arg2[%c0_1, %c0_2] : memref<1x128xf32, #tpu.memory_space<vmem>>, vector<1x128xf32>
    %c0_3 = arith.constant 0 : index
    %c0_4 = arith.constant 0 : index
    %2 = vector.load %arg3[%c0_3, %c0_4] : memref<1x128xf32, #tpu.memory_space<vmem>>, vector<1x128xf32>
    %cst = arith.constant dense<0.000000e+00> : vector<8xf32>
    %3 = vector.multi_reduction <add>, %0, %cst [1] : vector<8x128xf32> to vector<8xf32>
    %4 = vector.shape_cast %3 : vector<8xf32> to vector<8x1xf32>
    %cst_5 = arith.constant 3.125000e-02 : f32
    %5 = vector.broadcast %cst_5 : f32 to vector<8x1xf32>
    %6 = arith.mulf %4, %5 : vector<8x1xf32>
    %7 = vector.broadcast %6 : vector<8x1xf32> to vector<8x128xf32>
    %8 = arith.subf %0, %7 : vector<8x128xf32>
    %9 = arith.mulf %8, %8 : vector<8x128xf32>
    %cst_6 = arith.constant dense<0.000000e+00> : vector<8xf32>
    %10 = vector.multi_reduction <add>, %9, %cst_6 [1] : vector<8x128xf32> to vector<8xf32>
    %11 = vector.shape_cast %10 : vector<8xf32> to vector<8x1xf32>
    %12 = arith.mulf %6, %6 : vector<8x1xf32>
    %cst_7 = arith.constant 9.600000e+01 : f32
    %13 = vector.broadcast %cst_7 : f32 to vector<8x1xf32>
    %14 = arith.mulf %13, %12 : vector<8x1xf32>
    %15 = arith.subf %11, %14 : vector<8x1xf32>
    %cst_8 = arith.constant 3.125000e-02 : f32
    %16 = vector.broadcast %cst_8 : f32 to vector<8x1xf32>
    %17 = arith.mulf %15, %16 : vector<8x1xf32>
    %cst_9 = arith.constant 0.000000e+00 : f32
    %18 = vector.broadcast %cst_9 : f32 to vector<8x1xf32>
    %19 = arith.maximumf %17, %18 : vector<8x1xf32>
    %cst_10 = arith.constant 9.99999974E-6 : f32
    %20 = vector.broadcast %cst_10 : f32 to vector<8x1xf32>
    %21 = arith.addf %19, %20 : vector<8x1xf32>
    %22 = math.rsqrt %21 : vector<8x1xf32>
    %23 = vector.broadcast %22 : vector<8x1xf32> to vector<8x128xf32>
    %24 = arith.mulf %8, %23 : vector<8x128xf32>
    %25 = vector.broadcast %1 : vector<1x128xf32> to vector<8x128xf32>
    %26 = arith.mulf %24, %25 : vector<8x128xf32>
    %27 = vector.broadcast %2 : vector<1x128xf32> to vector<8x128xf32>
    %28 = arith.addf %26, %27 : vector<8x128xf32>
    %c0_11 = arith.constant 0 : index
    %c0_12 = arith.constant 0 : index
    %29 = vector.load %arg4[%c0_11, %c0_12] : memref<128x32xf32, #tpu.memory_space<vmem>>, vector<128x32xf32>
    %cst_13 = arith.constant dense<0.000000e+00> : vector<8x32xf32>
    %30 = tpu.matmul %28, %29, %cst_13 {dimension_numbers = #tpu.dot_dimension_numbers<[1], [0], [0], [1], [0, 0, 1, 1], [], []>} : vector<8x128xf32>, vector<128x32xf32>, vector<8x32xf32> -> vector<8x32xf32>
    %c0_14 = arith.constant 0 : index
    %c0_15 = arith.constant 0 : index
    %31 = vector.load %arg5[%c0_14, %c0_15] : memref<1x32xf32, #tpu.memory_space<vmem>>, vector<1x32xf32>
    %32 = vector.broadcast %31 : vector<1x32xf32> to vector<8x32xf32>
    %33 = arith.addf %30, %32 : vector<8x32xf32>
    %c0_16 = arith.constant 0 : index
    %c0_17 = arith.constant 0 : index
    %34 = vector.load %arg6[%c0_16, %c0_17] : memref<128x32xf32, #tpu.memory_space<vmem>>, vector<128x32xf32>
    %cst_18 = arith.constant dense<0.000000e+00> : vector<8x32xf32>
    %35 = tpu.matmul %28, %34, %cst_18 {dimension_numbers = #tpu.dot_dimension_numbers<[1], [0], [0], [1], [0, 0, 1, 1], [], []>} : vector<8x128xf32>, vector<128x32xf32>, vector<8x32xf32> -> vector<8x32xf32>
    %c0_19 = arith.constant 0 : index
    %c0_20 = arith.constant 0 : index
    %36 = vector.load %arg7[%c0_19, %c0_20] : memref<1x32xf32, #tpu.memory_space<vmem>>, vector<1x32xf32>
    %37 = vector.broadcast %36 : vector<1x32xf32> to vector<8x32xf32>
    %38 = arith.addf %35, %37 : vector<8x32xf32>
    %c0_21 = arith.constant 0 : index
    %c0_22 = arith.constant 0 : index
    %39 = vector.load %arg8[%c0_21, %c0_22] : memref<128x32xf32, #tpu.memory_space<vmem>>, vector<128x32xf32>
    %cst_23 = arith.constant dense<0.000000e+00> : vector<8x32xf32>
    %40 = tpu.matmul %28, %39, %cst_23 {dimension_numbers = #tpu.dot_dimension_numbers<[1], [0], [0], [1], [0, 0, 1, 1], [], []>} : vector<8x128xf32>, vector<128x32xf32>, vector<8x32xf32> -> vector<8x32xf32>
    %c0_24 = arith.constant 0 : index
    %c0_25 = arith.constant 0 : index
    %41 = vector.load %arg9[%c0_24, %c0_25] : memref<1x32xf32, #tpu.memory_space<vmem>>, vector<1x32xf32>
    %42 = vector.broadcast %41 : vector<1x32xf32> to vector<8x32xf32>
    %43 = arith.addf %40, %42 : vector<8x32xf32>
    %44 = vector.extract_strided_slice %33 {offsets = [0, 0], sizes = [8, 8], strides = [1, 1]} : vector<8x32xf32> to vector<8x8xf32>
    %45 = vector.extract_strided_slice %33 {offsets = [0, 8], sizes = [8, 8], strides = [1, 1]} : vector<8x32xf32> to vector<8x8xf32>
    %46 = vector.extract_strided_slice %33 {offsets = [0, 16], sizes = [8, 8], strides = [1, 1]} : vector<8x32xf32> to vector<8x8xf32>
    %47 = vector.extract_strided_slice %33 {offsets = [0, 24], sizes = [8, 8], strides = [1, 1]} : vector<8x32xf32> to vector<8x8xf32>
    %48 = vector.shape_cast %44 : vector<8x8xf32> to vector<1x8x8xf32>
    %49 = vector.shape_cast %45 : vector<8x8xf32> to vector<1x8x8xf32>
    %50 = vector.shape_cast %46 : vector<8x8xf32> to vector<1x8x8xf32>
    %51 = vector.shape_cast %47 : vector<8x8xf32> to vector<1x8x8xf32>
    %52 = tpu.concatenate %48, %49, %50, %51 in 0 : vector<1x8x8xf32>, vector<1x8x8xf32>, vector<1x8x8xf32>, vector<1x8x8xf32> -> vector<4x8x8xf32>
    %53 = vector.extract_strided_slice %38 {offsets = [0, 0], sizes = [8, 8], strides = [1, 1]} : vector<8x32xf32> to vector<8x8xf32>
    %54 = vector.extract_strided_slice %38 {offsets = [0, 8], sizes = [8, 8], strides = [1, 1]} : vector<8x32xf32> to vector<8x8xf32>
    %55 = vector.extract_strided_slice %38 {offsets = [0, 16], sizes = [8, 8], strides = [1, 1]} : vector<8x32xf32> to vector<8x8xf32>
    %56 = vector.extract_strided_slice %38 {offsets = [0, 24], sizes = [8, 8], strides = [1, 1]} : vector<8x32xf32> to vector<8x8xf32>
    %57 = vector.shape_cast %53 : vector<8x8xf32> to vector<1x8x8xf32>
    %58 = vector.shape_cast %54 : vector<8x8xf32> to vector<1x8x8xf32>
    %59 = vector.shape_cast %55 : vector<8x8xf32> to vector<1x8x8xf32>
    %60 = vector.shape_cast %56 : vector<8x8xf32> to vector<1x8x8xf32>
    %61 = tpu.concatenate %57, %58, %59, %60 in 0 : vector<1x8x8xf32>, vector<1x8x8xf32>, vector<1x8x8xf32>, vector<1x8x8xf32> -> vector<4x8x8xf32>
    %62 = vector.extract_strided_slice %43 {offsets = [0, 0], sizes = [8, 8], strides = [1, 1]} : vector<8x32xf32> to vector<8x8xf32>
    %63 = vector.extract_strided_slice %43 {offsets = [0, 8], sizes = [8, 8], strides = [1, 1]} : vector<8x32xf32> to vector<8x8xf32>
    %64 = vector.extract_strided_slice %43 {offsets = [0, 16], sizes = [8, 8], strides = [1, 1]} : vector<8x32xf32> to vector<8x8xf32>
    %65 = vector.extract_strided_slice %43 {offsets = [0, 24], sizes = [8, 8], strides = [1, 1]} : vector<8x32xf32> to vector<8x8xf32>
    %66 = vector.shape_cast %62 : vector<8x8xf32> to vector<1x8x8xf32>
    %67 = vector.shape_cast %63 : vector<8x8xf32> to vector<1x8x8xf32>
    %68 = vector.shape_cast %64 : vector<8x8xf32> to vector<1x8x8xf32>
    %69 = vector.shape_cast %65 : vector<8x8xf32> to vector<1x8x8xf32>
    %70 = tpu.concatenate %66, %67, %68, %69 in 0 : vector<1x8x8xf32>, vector<1x8x8xf32>, vector<1x8x8xf32>, vector<1x8x8xf32> -> vector<4x8x8xf32>
    "tpu.trace_start"() <{level = 10 : i32, message = "bqd,bkd->bqk"}> : () -> ()
    %cst_26 = arith.constant dense<0.000000e+00> : vector<4x8x8xf32>
    %71 = tpu.matmul %52, %61, %cst_26 {dimension_numbers = #tpu.dot_dimension_numbers<[2], [2], [1], [1], [0, 0, 0, 1, 1, 1], [0], [0]>} : vector<4x8x8xf32>, vector<4x8x8xf32>, vector<4x8x8xf32> -> vector<4x8x8xf32>
    "tpu.trace_stop"() : () -> ()
    %cst_27 = arith.constant dense<0xFF800000> : vector<4x8xf32>
    %72 = vector.multi_reduction <maximumf>, %71, %cst_27 [2] : vector<4x8x8xf32> to vector<4x8xf32>
    %73 = vector.shape_cast %72 : vector<4x8xf32> to vector<4x8x1xf32>
    %74 = vector.broadcast %73 : vector<4x8x1xf32> to vector<4x8x8xf32>
    %75 = arith.subf %71, %74 : vector<4x8x8xf32>
    %76 = math.exp %75 : vector<4x8x8xf32>
    %cst_28 = arith.constant dense<0.000000e+00> : vector<4x8xf32>
    %77 = vector.multi_reduction <add>, %76, %cst_28 [2] : vector<4x8x8xf32> to vector<4x8xf32>
    %78 = vector.shape_cast %77 : vector<4x8xf32> to vector<4x8x1xf32>
    %79 = tpu.reciprocal %78 {approx = true} : vector<4x8x1xf32> -> vector<4x8x1xf32>
    %80 = vector.broadcast %79 : vector<4x8x1xf32> to vector<4x8x8xf32>
    %81 = arith.mulf %76, %80 : vector<4x8x8xf32>
    "tpu.trace_start"() <{level = 10 : i32, message = "bqk,bkd->bqd"}> : () -> ()
    %cst_29 = arith.constant dense<0.000000e+00> : vector<4x8x8xf32>
    %82 = tpu.matmul %81, %70, %cst_29 {dimension_numbers = #tpu.dot_dimension_numbers<[2], [1], [1], [2], [0, 0, 0, 1, 1, 2], [0], [0]>} : vector<4x8x8xf32>, vector<4x8x8xf32>, vector<4x8x8xf32> -> vector<4x8x8xf32>
    "tpu.trace_stop"() : () -> ()
    %c0_30 = arith.constant 0 : index
    %c0_31 = arith.constant 0 : index
    %c0_32 = arith.constant 0 : index
    %83 = vector.load %arg10[%c0_30, %c0_31, %c0_32] : memref<4x8x128xf32, #tpu.memory_space<vmem>>, vector<4x8x128xf32>
    "tpu.trace_start"() <{level = 10 : i32, message = "hrd,hde->hre"}> : () -> ()
    %cst_33 = arith.constant dense<0.000000e+00> : vector<4x8x128xf32>
    %84 = tpu.matmul %82, %83, %cst_33 {dimension_numbers = #tpu.dot_dimension_numbers<[2], [1], [1], [2], [0, 0, 0, 1, 1, 2], [0], [0]>} : vector<4x8x8xf32>, vector<4x8x128xf32>, vector<4x8x128xf32> -> vector<4x8x128xf32>
    "tpu.trace_stop"() : () -> ()
    %cst_34 = arith.constant dense<0.000000e+00> : vector<8x128xf32>
    %85 = vector.multi_reduction <add>, %84, %cst_34 [0] : vector<4x8x128xf32> to vector<8x128xf32>
    %c0_35 = arith.constant 0 : index
    %c0_36 = arith.constant 0 : index
    %86 = vector.load %arg11[%c0_35, %c0_36] : memref<1x128xf32, #tpu.memory_space<vmem>>, vector<1x128xf32>
    %87 = vector.broadcast %86 : vector<1x128xf32> to vector<8x128xf32>
    %88 = arith.addf %85, %87 : vector<8x128xf32>
    %89 = arith.addf %0, %88 : vector<8x128xf32>
    %c0_37 = arith.constant 0 : index
    %c0_38 = arith.constant 0 : index
    %90 = vector.load %arg12[%c0_37, %c0_38] : memref<1x128xf32, #tpu.memory_space<vmem>>, vector<1x128xf32>
    %c0_39 = arith.constant 0 : index
    %c0_40 = arith.constant 0 : index
    %91 = vector.load %arg13[%c0_39, %c0_40] : memref<1x128xf32, #tpu.memory_space<vmem>>, vector<1x128xf32>
    %cst_41 = arith.constant dense<0.000000e+00> : vector<8xf32>
    %92 = vector.multi_reduction <add>, %89, %cst_41 [1] : vector<8x128xf32> to vector<8xf32>
    %93 = vector.shape_cast %92 : vector<8xf32> to vector<8x1xf32>
    %cst_42 = arith.constant 3.125000e-02 : f32
    %94 = vector.broadcast %cst_42 : f32 to vector<8x1xf32>
    %95 = arith.mulf %93, %94 : vector<8x1xf32>
    %96 = vector.broadcast %95 : vector<8x1xf32> to vector<8x128xf32>
    %97 = arith.subf %89, %96 : vector<8x128xf32>
    %98 = arith.mulf %97, %97 : vector<8x128xf32>
    %cst_43 = arith.constant dense<0.000000e+00> : vector<8xf32>
    %99 = vector.multi_reduction <add>, %98, %cst_43 [1] : vector<8x128xf32> to vector<8xf32>
    %100 = vector.shape_cast %99 : vector<8xf32> to vector<8x1xf32>
    %101 = arith.mulf %95, %95 : vector<8x1xf32>
    %cst_44 = arith.constant 9.600000e+01 : f32
    %102 = vector.broadcast %cst_44 : f32 to vector<8x1xf32>
    %103 = arith.mulf %102, %101 : vector<8x1xf32>
    %104 = arith.subf %100, %103 : vector<8x1xf32>
    %cst_45 = arith.constant 3.125000e-02 : f32
    %105 = vector.broadcast %cst_45 : f32 to vector<8x1xf32>
    %106 = arith.mulf %104, %105 : vector<8x1xf32>
    %cst_46 = arith.constant 0.000000e+00 : f32
    %107 = vector.broadcast %cst_46 : f32 to vector<8x1xf32>
    %108 = arith.maximumf %106, %107 : vector<8x1xf32>
    %cst_47 = arith.constant 9.99999974E-6 : f32
    %109 = vector.broadcast %cst_47 : f32 to vector<8x1xf32>
    %110 = arith.addf %108, %109 : vector<8x1xf32>
    %111 = math.rsqrt %110 : vector<8x1xf32>
    %112 = vector.broadcast %111 : vector<8x1xf32> to vector<8x128xf32>
    %113 = arith.mulf %97, %112 : vector<8x128xf32>
    %114 = vector.broadcast %90 : vector<1x128xf32> to vector<8x128xf32>
    %115 = arith.mulf %113, %114 : vector<8x128xf32>
    %116 = vector.broadcast %91 : vector<1x128xf32> to vector<8x128xf32>
    %117 = arith.addf %115, %116 : vector<8x128xf32>
    %c0_48 = arith.constant 0 : index
    %c0_49 = arith.constant 0 : index
    %118 = vector.load %arg17[%c0_48, %c0_49] : memref<1x128xf32, #tpu.memory_space<vmem>>, vector<1x128xf32>
    %119 = vector.broadcast %118 : vector<1x128xf32> to vector<8x128xf32>
    %120 = arith.addf %89, %119 : vector<8x128xf32>
    %c0_50 = arith.constant 0 : index
    %c0_51 = arith.constant 0 : index
    %121 = vector.load %arg14[%c0_50, %c0_51] : memref<128x128xf32, #tpu.memory_space<vmem>>, vector<128x128xf32>
    %cst_52 = arith.constant dense<0.000000e+00> : vector<8x128xf32>
    %122 = tpu.matmul %117, %121, %cst_52 {dimension_numbers = #tpu.dot_dimension_numbers<[1], [0], [0], [1], [0, 0, 1, 1], [], []>} : vector<8x128xf32>, vector<128x128xf32>, vector<8x128xf32> -> vector<8x128xf32>
    %c0_53 = arith.constant 0 : index
    %c0_54 = arith.constant 0 : index
    %123 = vector.load %arg15[%c0_53, %c0_54] : memref<1x128xf32, #tpu.memory_space<vmem>>, vector<1x128xf32>
    %124 = vector.broadcast %123 : vector<1x128xf32> to vector<8x128xf32>
    %125 = arith.addf %122, %124 : vector<8x128xf32>
    %cst_55 = arith.constant 0.000000e+00 : f32
    %126 = vector.broadcast %cst_55 : f32 to vector<8x128xf32>
    %127 = arith.maximumf %125, %126 : vector<8x128xf32>
    %c0_56 = arith.constant 0 : index
    %c0_57 = arith.constant 0 : index
    %128 = vector.load %arg16[%c0_56, %c0_57] : memref<128x128xf32, #tpu.memory_space<vmem>>, vector<128x128xf32>
    %cst_58 = arith.constant dense<0.000000e+00> : vector<8x128xf32>
    %129 = tpu.matmul %127, %128, %cst_58 {dimension_numbers = #tpu.dot_dimension_numbers<[1], [0], [0], [1], [0, 0, 1, 1], [], []>} : vector<8x128xf32>, vector<128x128xf32>, vector<8x128xf32> -> vector<8x128xf32>
    %130 = arith.addf %120, %129 : vector<8x128xf32>
    %c0_59 = arith.constant 0 : index
    %c0_60 = arith.constant 0 : index
    %131 = vector.load %arg18[%c0_59, %c0_60] : memref<8x128xf32, #tpu.memory_space<vmem>>, vector<8x128xf32>
    tpu.vector_store %arg18[%c0_59, %c0_60], %130 {strides = array<i32>} : memref<8x128xf32, #tpu.memory_space<vmem>>, vector<8x128xf32>,
    return
  }
  func.func @transform_0(%arg0: i32) -> (i32, i32) {
    %c0_i32 = arith.constant 0 : i32
    %c0_i32_0 = arith.constant 0 : i32
    return %arg0, %c0_i32 : i32, i32
  }
  func.func @transform_1(%arg0: i32) -> (i32, i32) {
    %c0_i32 = arith.constant 0 : i32
    %c0_i32_0 = arith.constant 0 : i32
    %c0_i32_1 = arith.constant 0 : i32
    return %c0_i32, %c0_i32_0 : i32, i32
  }
  func.func @transform_2(%arg0: i32) -> (i32, i32) {
    %c0_i32 = arith.constant 0 : i32
    %c0_i32_0 = arith.constant 0 : i32
    %c0_i32_1 = arith.constant 0 : i32
    return %c0_i32, %c0_i32_0 : i32, i32
  }
  func.func @transform_3(%arg0: i32) -> (i32, i32) {
    %c0_i32 = arith.constant 0 : i32
    %c0_i32_0 = arith.constant 0 : i32
    %c0_i32_1 = arith.constant 0 : i32
    return %c0_i32, %c0_i32_0 : i32, i32
  }
  func.func @transform_4(%arg0: i32) -> (i32, i32) {
    %c0_i32 = arith.constant 0 : i32
    %c0_i32_0 = arith.constant 0 : i32
    %c0_i32_1 = arith.constant 0 : i32
    return %c0_i32, %c0_i32_0 : i32, i32
  }
  func.func @transform_5(%arg0: i32) -> (i32, i32) {
    %c0_i32 = arith.constant 0 : i32
    %c0_i32_0 = arith.constant 0 : i32
    %c0_i32_1 = arith.constant 0 : i32
    return %c0_i32, %c0_i32_0 : i32, i32
  }
  func.func @transform_6(%arg0: i32) -> (i32, i32) {
    %c0_i32 = arith.constant 0 : i32
    %c0_i32_0 = arith.constant 0 : i32
    %c0_i32_1 = arith.constant 0 : i32
    return %c0_i32, %c0_i32_0 : i32, i32
  }
  func.func @transform_7(%arg0: i32) -> (i32, i32) {
    %c0_i32 = arith.constant 0 : i32
    %c0_i32_0 = arith.constant 0 : i32
    %c0_i32_1 = arith.constant 0 : i32
    return %c0_i32, %c0_i32_0 : i32, i32
  }
  func.func @transform_8(%arg0: i32) -> (i32, i32) {
    %c0_i32 = arith.constant 0 : i32
    %c0_i32_0 = arith.constant 0 : i32
    %c0_i32_1 = arith.constant 0 : i32
    return %c0_i32, %c0_i32_0 : i32, i32
  }
  func.func @transform_9(%arg0: i32) -> (i32, i32, i32) {
    %c0_i32 = arith.constant 0 : i32
    %c0_i32_0 = arith.constant 0 : i32
    %c0_i32_1 = arith.constant 0 : i32
    %c0_i32_2 = arith.constant 0 : i32
    return %c0_i32, %c0_i32_0, %c0_i32_1 : i32, i32, i32
  }
  func.func @transform_10(%arg0: i32) -> (i32, i32) {
    %c0_i32 = arith.constant 0 : i32
    %c0_i32_0 = arith.constant 0 : i32
    %c0_i32_1 = arith.constant 0 : i32
    return %c0_i32, %c0_i32_0 : i32, i32
  }
  func.func @transform_11(%arg0: i32) -> (i32, i32) {
    %c0_i32 = arith.constant 0 : i32
    %c0_i32_0 = arith.constant 0 : i32
    %c0_i32_1 = arith.constant 0 : i32
    return %c0_i32, %c0_i32_0 : i32, i32
  }
  func.func @transform_12(%arg0: i32) -> (i32, i32) {
    %c0_i32 = arith.constant 0 : i32
    %c0_i32_0 = arith.constant 0 : i32
    %c0_i32_1 = arith.constant 0 : i32
    return %c0_i32, %c0_i32_0 : i32, i32
  }
  func.func @transform_13(%arg0: i32) -> (i32, i32) {
    %c0_i32 = arith.constant 0 : i32
    %c0_i32_0 = arith.constant 0 : i32
    %c0_i32_1 = arith.constant 0 : i32
    return %c0_i32, %c0_i32_0 : i32, i32
  }
  func.func @transform_14(%arg0: i32) -> (i32, i32) {
    %c0_i32 = arith.constant 0 : i32
    %c0_i32_0 = arith.constant 0 : i32
    %c0_i32_1 = arith.constant 0 : i32
    return %c0_i32, %c0_i32_0 : i32, i32
  }
  func.func @transform_15(%arg0: i32) -> (i32, i32) {
    %c0_i32 = arith.constant 0 : i32
    %c0_i32_0 = arith.constant 0 : i32
    %c0_i32_1 = arith.constant 0 : i32
    return %c0_i32, %c0_i32_0 : i32, i32
  }
  func.func @transform_16(%arg0: i32) -> (i32, i32) {
    %c0_i32 = arith.constant 0 : i32
    %c0_i32_0 = arith.constant 0 : i32
    %c0_i32_1 = arith.constant 0 : i32
    return %c0_i32, %c0_i32_0 : i32, i32
  }
  func.func @transform_17(%arg0: i32) -> (i32, i32) {
    %c0_i32 = arith.constant 0 : i32
    %c0_i32_0 = arith.constant 0 : i32
    return %arg0, %c0_i32 : i32, i32
  }
}

</mosaic_0001>

<bundles_post_ra>
// kernel: tpu_custom_call.1
= control target key start
LH: loop header
LB: loop body
LE: loop exit
PB: predicated region body
PF: predicated region fallthrough
CT: control target
= control target key end

     0   :  { %s3371_s0 = inlined_call_operand.vmem [shape: f32[16,128], index: 0, kind: input, shape index: {}]   ;;  %s3372_s1 = inlined_call_operand.vmem [shape: f32[1,128], index: 1, kind: input, shape index: {}]   ;;  %s3373_s2 = inlined_call_operand.vmem [shape: f32[1,128], index: 2, kind: input, shape index: {}]   ;;  %s3374_s3 = inlined_call_operand.vmem [shape: f32[128,32], index: 3, kind: input, shape index: {}]   ;;  %s3375_s4 = inlined_call_operand.vmem [shape: f32[1,32], index: 4, kind: input, shape index: {}]   ;;  %s3376_s5 = inlined_call_operand.vmem [shape: f32[128,32], index: 5, kind: input, shape index: {}]   ;;  %s3377_s6 = inlined_call_operand.vmem [shape: f32[1,32], index: 6, kind: input, shape index: {}]   ;;  %s3378_s7 = inlined_call_operand.vmem [shape: f32[128,32], index: 7, kind: input, shape index: {}]   ;;  %s3379_s8 = inlined_call_operand.vmem [shape: f32[1,32], index: 8, kind: input, shape index: {}]   ;;  %s3380_s9 = inlined_call_operand.vmem [shape: f32[4,8,128], index: 9, kind: input, shape index: {}]   ;;  %s3381_s10 = inlined_call_operand.vmem [shape: f32[1,128], index: 10, kind: input, shape index: {}]   ;;  %s3382_s11 = inlined_call_operand.vmem [shape: f32[1,128], index: 11, kind: input, shape index: {}]   ;;  %s3383_s12 = inlined_call_operand.vmem [shape: f32[1,128], index: 12, kind: input, shape index: {}]   ;;  %s3384_s13 = inlined_call_operand.vmem [shape: f32[128,128], index: 13, kind: input, shape index: {}]   ;;  %s3385_s14 = inlined_call_operand.vmem [shape: f32[1,128], index: 14, kind: input, shape index: {}]   ;;  %s3386_s15 = inlined_call_operand.vmem [shape: f32[128,128], index: 15, kind: input, shape index: {}]   ;;  %s3387_s16 = inlined_call_operand.vmem [shape: f32[1,128], index: 16, kind: input, shape index: {}]   ;;  %s3388_s17 = inlined_call_operand.hbm [shape: f32[16,128], index: 17, kind: output, shape index: {}]  }
   0x1   :  { %3395 = sst [smem:[#allocation11_spill]] %s3371_s0 }
   0x2   :  { %3396 = sst [smem:[#allocation12_spill]] %s3372_s1 }
   0x3   :  { %22 = vsyncpa [#allocation3], 0 }
   0x4   :  { %24 = vsyncpa [#allocation3 + $0x1], 0  ;;  %s2840_s24 = smov 0   ;;  %s2842_s25 = smov 0  }
   0x5   :  { %s2844_s26 = smov 0   ;;  %s2846_s27 = smov 0  }
   0x6 LB: > { %3397 = sst [smem:[#allocation5_spill]] %s2729_s24  ;;  %s2861_s28 = sadd.s32 4294967295, %s2741_s27   ;;  %s2741_s27 = sphi %s2846_s27, %s3410_s27   ;;  %s2737_s26 = sphi %s2844_s26, %s3412_s26   ;;  %s2733_s25 = sphi %s2842_s25, %s3414_s25   ;;  %s2729_s24 = sphi %s2840_s24, %s3413_s24  }
   0x7   : > { %3398 = sst [smem:[#allocation6_spill]] %s2737_s26  ;;  %s2114_s29 = sadd.s32 4294967294, %s2741_s27  }
   0x8   : > { %3399 = sst [smem:[#allocation7_spill]] %s2741_s27  ;;  %s2865_s0 = sadd.s32 1, %s2741_s27  }
   0x9   : > { %3400 = sst [smem:[#allocation8_spill]] %s2865_s0  ;;  %s399_s30 = sadd.s32 1, %s2737_s26 }
   0xa   : > { %s396_s18 = ssub.s32 %s2741_s27, %s2865_s0  ;;  %p409_p0 = scmp.ne.s32.totalorder %s2737_s26, %s2733_s25 }
   0xb   : > { %p397_p1 = scmp.eq.s32.totalorder %s396_s18, 0  ;;  %p410_p2 = scmp.eq.s32.totalorder %s2861_s28, 1 }
   0xc   : > { %p415_p3 = scmp.ne.s32.totalorder %s2733_s25, %s2729_s24  ;;  %p416_p4 = scmp.eq.s32.totalorder %s2114_s29, 1 }
   0xd   : > { %s2876_s19 = scalar_select %p397_p1, %s2737_s26, %s399_s30  }
   0xe   : > { %p2878_p5 = por %p410_p2, %p409_p0  ;;  %p2882_p6 = por %p416_p4, %p415_p3 }
   0xf   : > { %3401 = sst [smem:[#allocation9_spill]] %s2876_s19  ;;  %p2117_p7 = scmp.ge.s32.totalorder %s2741_s27, 1 }
  0x10   : > { %s3403_s20 = scalar_select %p2882_p6, 1, 0 }
  0x11   : > { %p489_p8 = scmp.lt.s32.totalorder %s2741_s27, 3 }
  0x12   : > { %3404 = sst [smem:[#allocation10_spill]] %s3403_s20 }
  0x13   : > { %p490_p9 = pnand %p2117_p7, %p489_p8 }
  0x14   : > { %p540_p10 = scmp.lt.s32.totalorder (!%p490_p9), %s2861_s28, 1  ;;  %s3405_s30 = sld [smem:[#allocation11_spill]] (!%p490_p9)  ;;  %v576_v1 = vld [vmem:[%s3374_s3] sm:$0xff] (!%p490_p9)  ;;  %v577_v2 = vld [vmem:[%s3374_s3 + $0x8] sm:$0xff] (!%p490_p9)  ;;  %v2743_v4 = vmov (!%p490_p9), 0.0|0.0   ;;  %v578_v7 = vld [vmem:[%s3374_s3 + $0x10] sm:$0xff] (!%p490_p9) }
  0x15   : > { %493 = sbr.rel (%p490_p9) target bundleno = 2449 (0x991), region = 88  ;;  %v669_v3 = vld [vmem:[%s3376_s5] sm:$0xff] (!%p490_p9)  ;;  %2494 = vmatprep.subr.bf16.mxu0 (!%p490_p9), %v2743_v4  ;;  %v2495_v5 = vpack.c.bf16 (!%p490_p9), %v577_v2, %v576_v1  ;;  %2518 = vmatprep.subr.bf16.mxu1 (!%p490_p9), %v2743_v4  ;;  %v670_v6 = vld [vmem:[%s3376_s5 + $0x8] sm:$0xff] (!%p490_p9)  ;;  %v579_v8 = vld [vmem:[%s3374_s3 + $0x18] sm:$0xff] (!%p490_p9)  ;;  %vm2744_vm0 = vmmov (!%p490_p9), 0   ;;  %v2745_v41 = vmov (!%p490_p9), 0.0  }
  0x16   : > { %v2519_v9 = vpack.c.bf16 (!%p490_p9), %v670_v6, %v669_v3  ;;  %v671_v10 = vld [vmem:[%s3376_s5 + $0x10] sm:$0xff] (!%p490_p9)  ;;  %v672_v11 = vld [vmem:[%s3376_s5 + $0x18] sm:$0xff] (!%p490_p9)  ;;  %v2498_v12 = vpack.c.bf16 (!%p490_p9), %v579_v8, %v578_v7  ;;  %v580_v18 = vld [vmem:[%s3374_s3 + $0x20] sm:$0xff] (!%p490_p9)  ;;  %2291 = vmatprep.mubr.msk.f32.mxu0 (!%p490_p9), %vm2744_vm0, %v2745_v41  ;;  %2326 = vmatprep.mubr.msk.f32.mxu1 (!%p490_p9), %vm2744_vm0, %v2745_v41  ;;  %vm879_vm1 = vcmask (!%p490_p9), 64512   ;;  %s2746_s19 = smov (!%p490_p9), 112   ;;  %s2747_s0 = smov (!%p490_p9), 120  }
  0x17   : > { %2496 = vmatpush3.bf16.msra.mxu0 (!%p490_p9), %v2495_v5  ;;  %v2522_v13 = vpack.c.bf16 (!%p490_p9), %v672_v11, %v671_v10  ;;  %v581_v19 = vld [vmem:[%s3374_s3 + $0x28] sm:$0xff] (!%p490_p9)  ;;  %v673_v21 = vld [vmem:[%s3376_s5 + $0x20] sm:$0xff] (!%p490_p9)  ;;  %v582_v24 = vld [vmem:[%s3374_s3 + $0x30] sm:$0xff] (!%p490_p9)  ;;  %s2748_s20 = smov (!%p490_p9), 104   ;;  %s2147_s23 = sshll.u32 (!%p490_p9), %s2861_s28, 7 }
  0x18   : > { %2520 = vmatpush3.bf16.msra.mxu1 (!%p490_p9), %v2519_v9  ;;  %2497 = vmatprep.subr.bf16.mxu0 (!%p490_p9), %v2743_v4  ;;  %v2501_v20 = vpack.c.bf16 (!%p490_p9), %v581_v19, %v580_v18  ;;  %v674_v22 = vld [vmem:[%s3376_s5 + $0x28] sm:$0xff] (!%p490_p9)  ;;  %v583_v25 = vld [vmem:[%s3374_s3 + $0x38] sm:$0xff] (!%p490_p9)  ;;  %v675_v27 = vld [vmem:[%s3376_s5 + $0x30] sm:$0xff] (!%p490_p9) }
  0x19   : > { %2521 = vmatprep.subr.bf16.mxu1 (!%p490_p9), %v2743_v4  ;;  %v2525_v23 = vpack.c.bf16 (!%p490_p9), %v674_v22, %v673_v21  ;;  %v2504_v26 = vpack.c.bf16 (!%p490_p9), %v583_v25, %v582_v24  ;;  %v676_v28 = vld [vmem:[%s3376_s5 + $0x38] sm:$0xff] (!%p490_p9)  ;;  %v584_v30 = vld [vmem:[%s3374_s3 + $0x40] sm:$0xff] (!%p490_p9)  ;;  %v585_v31 = vld [vmem:[%s3374_s3 + $0x48] sm:$0xff] (!%p490_p9) }
  0x1a   : > { %v2528_v29 = vpack.c.bf16 (!%p490_p9), %v676_v28, %v675_v27  ;;  %v2507_v32 = vpack.c.bf16 (!%p490_p9), %v585_v31, %v584_v30  ;;  %v677_v33 = vld [vmem:[%s3376_s5 + $0x40] sm:$0xff] (!%p490_p9)  ;;  %v678_v34 = vld [vmem:[%s3376_s5 + $0x48] sm:$0xff] (!%p490_p9)  ;;  %v586_v36 = vld [vmem:[%s3374_s3 + $0x50] sm:$0xff] (!%p490_p9) }
  0x1b   : > { %2499 = vmatpush3.bf16.msra.mxu0 (!%p490_p9), %v2498_v12  ;;  %v2531_v35 = vpack.c.bf16 (!%p490_p9), %v678_v34, %v677_v33  ;;  %v587_v37 = vld [vmem:[%s3374_s3 + $0x58] sm:$0xff] (!%p490_p9)  ;;  %v679_v38 = vld [vmem:[%s3376_s5 + $0x50] sm:$0xff] (!%p490_p9)  ;;  %v588_v43 = vld [vmem:[%s3374_s3 + $0x60] sm:$0xff] (!%p490_p9) }
  0x1c   : > { %s541_s21 = scalar_select %p540_p10, %s2861_s28, 1  ;;  %2523 = vmatpush3.bf16.msra.mxu1 %v2522_v13  ;;  %2500 = vmatprep.subr.bf16.mxu0 %v2743_v4  ;;  %v2510_v39 = vpack.c.bf16 %v587_v37, %v586_v36  ;;  %v680_v40 = vld [vmem:[%s3376_s5 + $0x58] sm:$0xff]  ;;  %v589_v44 = vld [vmem:[%s3374_s3 + $0x68] sm:$0xff]  ;;  %v681_v45 = vld [vmem:[%s3376_s5 + $0x60] sm:$0xff] }
  0x1d   : > { %2524 = vmatprep.subr.bf16.mxu1 %v2743_v4  ;;  %v2534_v42 = vpack.c.bf16 %v680_v40, %v679_v38  ;;  %v682_v46 = vld [vmem:[%s3376_s5 + $0x68] sm:$0xff]  ;;  %v2513_v47 = vpack.c.bf16 %v589_v44, %v588_v43  ;;  %v590_v49 = vld [vmem:[%s3374_s3 + $0x70] sm:$0xff]  ;;  %v591_v50 = vld [vmem:[%s3374_s3 + $0x78] sm:$0xff] }
  0x1e   : > { %s2119_s22 = sshll.u32 %s541_s21, 3  ;;  %v2537_v48 = vpack.c.bf16 %v682_v46, %v681_v45  ;;  %v683_v51 = vld [vmem:[%s3376_s5 + $0x70] sm:$0xff]  ;;  %v684_v52 = vld [vmem:[%s3376_s5 + $0x78] sm:$0xff]  ;;  %v2516_v53 = vpack.c.bf16 %v591_v50, %v590_v49  ;;  %s3406_s21 = sld [smem:[#allocation12_spill]]  ;;  %v762_v2 = vld [vmem:[%s3378_s7] sm:$0xff] }
  0x1f   : > { %s543_s18 = scalar_lea.vmem %s3405_s30, %s2119_s22  ;;  %2502 = vmatpush3.bf16.msra.mxu0 %v2501_v20  ;;  %v2540_v54 = vpack.c.bf16 %v684_v52, %v683_v51  ;;  %v763_v3 = vld [vmem:[%s3378_s7 + $0x8] sm:$0xff]  ;;  %v2121_v5 = vld [vmem:[%s3373_s2] ss:$0 sm:$0xff]  ;;  %v764_v9 = vld [vmem:[%s3378_s7 + $0x10] sm:$0xff]  ;;  %s3329_s22 = scalar_lea.hbm %s3388_s17, %s2147_s23 }
  0x20   : > { %v2893_v0 = vld [vmem:[%s543_s18] sm:$0xff]  ;;  %2526 = vmatpush3.bf16.msra.mxu1 %v2525_v23  ;;  %2503 = vmatprep.subr.bf16.mxu0 %v2743_v4  ;;  %v2543_v7 = vpack.c.bf16 %v763_v3, %v762_v2  ;;  %v765_v10 = vld [vmem:[%s3378_s7 + $0x18] sm:$0xff]  ;;  %v767_v13 = vld [vmem:[%s3378_s7 + $0x28] sm:$0xff] }
  0x21   : > { %547 = vadd.xlane.f32.xlu0 %v2893_v0  ;;  %2527 = vmatprep.subr.bf16.mxu1 %v2743_v4  ;;  %v2546_v11 = vpack.c.bf16 %v765_v10, %v764_v9  ;;  %v766_v12 = vld [vmem:[%s3378_s7 + $0x20] sm:$0xff]  ;;  %v771_v19 = vld [vmem:[%s3378_s7 + $0x48] sm:$0xff]  ;;  %v772_v21 = vld [vmem:[%s3378_s7 + $0x50] sm:$0xff] }
  0x22   : > { %v770_v18 = vld [vmem:[%s3378_s7 + $0x40] sm:$0xff]  ;;  %v773_v22 = vld [vmem:[%s3378_s7 + $0x58] sm:$0xff]  ;;  %v775_v25 = vld [vmem:[%s3378_s7 + $0x68] sm:$0xff] }
  0x23   : > { %2505 = vmatpush3.bf16.msra.mxu0 %v2504_v26  ;;  %v2555_v20 = vpack.c.bf16 %v771_v19, %v770_v18  ;;  %v2558_v23 = vpack.c.bf16 %v773_v22, %v772_v21  ;;  %v774_v24 = vld [vmem:[%s3378_s7 + $0x60] sm:$0xff]  ;;  %v776_v27 = vld [vmem:[%s3378_s7 + $0x70] sm:$0xff]  ;;  %v777_v28 = vld [vmem:[%s3378_s7 + $0x78] sm:$0xff] }
  0x24   : > { %2529 = vmatpush3.bf16.msra.mxu1 %v2528_v29  ;;  %2506 = vmatprep.subr.bf16.mxu0 %v2743_v4  ;;  %v2120_v63 = vld [vmem:[%s3406_s21] ss:$0 sm:$0xff]  ;;  %v2561_v26 = vpack.c.bf16 %v775_v25, %v774_v24  ;;  %v2564_v29 = vpack.c.bf16 %v777_v28, %v776_v27 }
  0x25   : > { %2530 = vmatprep.subr.bf16.mxu1 %v2743_v4  ;;  %v2123_v30 = vld [vmem:[%s3377_s6] ss:$0 sm:$0xff] }
  0x26   : > { %v2122_v36 = vld [vmem:[%s3375_s4] ss:$0 sm:$0xff] }
  0x27   : > { %2508 = vmatpush3.bf16.msra.mxu0 %v2507_v32  ;;  %v2124_v46 = vld [vmem:[%s3379_s8] ss:$0 sm:$0xff] }
  0x28   : > { %2532 = vmatpush3.bf16.msra.mxu1 %v2531_v35  ;;  %2509 = vmatprep.subr.bf16.mxu0 %v2743_v4  ;;  %v1512_v22 = vld [vmem:[%s3380_s9] sm:$0xff] }
  0x29   : > { %2533 = vmatprep.subr.bf16.mxu1 %v2743_v4 }
  0x2b   : > { %2511 = vmatpush3.bf16.msra.mxu0 %v2510_v39 }
  0x2c   : > { %2535 = vmatpush3.bf16.msra.mxu1 %v2534_v42  ;;  %2512 = vmatprep.subr.bf16.mxu0 %v2743_v4 }
  0x2d   : > { %2536 = vmatprep.subr.bf16.mxu1 %v2743_v4 }
  0x2f   : > { %2514 = vmatpush3.bf16.msra.mxu0 %v2513_v47 }
  0x30   : > { %2538 = vmatpush3.bf16.msra.mxu1 %v2537_v48  ;;  %2515 = vmatprep.subr.bf16.mxu0 %v2743_v4 }
  0x31   : > { %2539 = vmatprep.subr.bf16.mxu1 %v2743_v4 }
  0x33   : > { %2517 = vmatpush3.bf16.msra.mxu0 %v2516_v53 }
  0x34   : > { %2541 = vmatpush3.bf16.msra.mxu1 %v2540_v54  ;;  %2542 = vmatprep.subr.bf16.mxu0 %v2743_v4 }
  0x35   : > { %2364 = vmatprep.subr.mxu1 %v2745_v41 }
  0xae   : > { %v548_v14 = vpop.xlane.xlu0 %547 }
  0xaf   : > { %v2926_v15 = vmul.f32 0.03125, %v548_v14  ;;  %v2549_v14 = vpack.c.bf16 %v767_v13, %v766_v12 }
  0xb1   : > { %v2930_v16 = vsub.f32 %v2893_v0, %v2926_v15  ;;  %v554_v55 = vmul.f32 %v2926_v15, %v2926_v15  ;;  %v768_v15 = vld [vmem:[%s3378_s7 + $0x30] sm:$0xff] }
  0xb3   : > { %v551_v17 = vmul.f32 %v2930_v16, %v2930_v16  ;;  %v555_v56 = vmul.f32 96.0, %v554_v55 }
  0xb5   : > { %552 = vadd.xlane.f32.xlu0 %v551_v17 }
 0x142   : > { %v553_v57 = vpop.xlane.xlu0 %552 }
 0x143   : > { %v556_v58 = vsub.f32 %v553_v57, %v555_v56 }
 0x145   : > { %v557_v59 = vmul.f32 0.03125, %v556_v58 }
 0x147   : > { %v558_v60 = vmax.f32 %v557_v59, 0.0 }
 0x149   : > { %v559_v61 = vadd.f32 1e-05, %v558_v60 }
 0x14b   : > { %2659 = vrsqrt.f32 %v559_v61 }
 0x155   : > { %v2660_v62 = vpop.eup %2659 }
 0x156   : > { %v561_v1 = vmul.f32 %v2660_v62, %v2930_v16  ;;  %v769_v16 = vld [vmem:[%s3378_s7 + $0x38] sm:$0xff] }
 0x157   : > { %v2552_v17 = vpack.c.bf16 %v769_v16, %v768_v15 }
 0x158   : > { %v568_v6 = vmul.f32 %v2120_v63, %v561_v1 }
 0x15a   : > { %v575_v8 = vadd.f32 %v2121_v5, %v568_v6 }
 0x15c   : > { %2292 = vmatmul.mubr.f32.vlgmr.msra.gmra.mrb[0].mxu0 %v575_v8  ;;  %2327 = vmatmul.mubr.f32.vlgmr.msra.gmra.mrb[0].mxu1 %v575_v8 }
 0x15d   : > { %2544 = vmatpush3.bf16.msra.mxu0 %v2543_v7  ;;  %2361 = vmatprep.mubr.msk.f32.mxu0 %vm2744_vm0, %v2745_v41 }
 0x15e   : > { %2545 = vmatprep.subr.bf16.mxu0 %v2743_v4  ;;  %2366 = vmatprep.mubr.msk.f32.mxu1 %vm2744_vm0, %v2745_v41 }
 0x161   : > { %2547 = vmatpush3.bf16.msra.mxu0 %v2546_v11 }
 0x162   : > { %2548 = vmatprep.subr.bf16.mxu0 %v2743_v4 }
 0x165   : > { %2550 = vmatpush3.bf16.msra.mxu0 %v2549_v14 }
 0x166   : > { %2551 = vmatprep.subr.bf16.mxu0 %v2743_v4 }
 0x169   : > { %2553 = vmatpush3.bf16.msra.mxu0 %v2552_v17 }
 0x16a   : > { %2554 = vmatprep.subr.bf16.mxu0 %v2743_v4 }
 0x16d   : > { %2556 = vmatpush3.bf16.msra.mxu0 %v2555_v20 }
 0x16e   : > { %2557 = vmatprep.subr.bf16.mxu0 %v2743_v4 }
 0x171   : > { %2559 = vmatpush3.bf16.msra.mxu0 %v2558_v23 }
 0x172   : > { %2560 = vmatprep.subr.bf16.mxu0 %v2743_v4 }
 0x175   : > { %2562 = vmatpush3.bf16.msra.mxu0 %v2561_v26 }
 0x176   : > { %2563 = vmatprep.subr.bf16.mxu0 %v2743_v4 }
 0x179   : > { %2565 = vmatpush3.bf16.msra.mxu0 %v2564_v29 }
 0x17a   : > { %2404 = vmatprep.subr.mxu0 %v2745_v41 }
 0x17c   : > { %2362 = vmatmul.mubr.f32.vlgmr.msra.gmra.mrb[2].mxu0 %v575_v8 }
 0x17d   : > { %2406 = vmatprep.mubr.msk.f32.mxu0 %vm2744_vm0, %v2745_v41  ;;  %2405 = vmatpush3.msra.mxu0 %v1512_v22  ;;  %v1873_v22 = vld [vmem:[%s3384_s13 + $0x70] sm:$0xff] }
 0x17e   : > { %2414 = vmatprep.subr.mxu0 %v2745_v41 }
 0x22f   : > { %v665_v31 = vpop.f32.mrb[0].mxu0  ;;  %v758_v32 = vpop.f32.mrb[0].mxu1 }
 0x230   : > { %v759_v33 = vadd.f32 %v2123_v30, %v758_v32  ;;  %v2293_v34 = vpop.f32.mrb[1].mxu0  ;;  %v2328_v35 = vpop.f32.mrb[1].mxu1  ;;  %v666_v37 = vadd.f32 %v2122_v36, %v665_v31  ;;  %v1514_v36 = vld [vmem:[%s3380_s9 + $0x10] sm:$0xff] }
 0x231   : > { %v1513_v35 = vld [vmem:[%s3380_s9 + $0x8] sm:$0xff] }
 0x232   : > { %865 = vrot.lane.b32.xlu0 %v759_v33, %s2746_s19  ;;  %863 = vrot.lane.b32.xlu1 %v759_v33, %s2747_s0 }
 0x233   : > { %2365 = vmatpush3.xpose.msk.msra.mxu1 %vm879_vm1, %v759_v33 }
 0x234   : > { %2369 = vmatprep.subr.mxu1 %v2745_v41 }
 0x236   : > { %2367 = vmatmul.mubr.msk.f32.vlgmr.msra.gmra.mrb[2].mxu1 %vm879_vm1, %v666_v37  ;;  %856 = vrot.lane.b32.xlu1 %v666_v37, %s2747_s0 }
 0x237   : > { %2371 = vmatprep.mubr.msk.f32.mxu1 %vm2744_vm0, %v2745_v41 }
 0x23a   : > { %858 = vrot.lane.b32.xlu1 %v666_v37, %s2746_s19 }
 0x23e   : > { %867 = vrot.lane.b32.xlu1 %v759_v33, %s2748_s20 }
 0x242   : > { %860 = vrot.lane.b32.xlu1 %v666_v37, %s2748_s20 }
 0x24f   : > { %v851_v38 = vpop.f32.mrb[2].mxu0 }
 0x250   : > { %v2363_v39 = vpop.f32.mrb[3].mxu0  ;;  %v852_v47 = vadd.f32 %v2124_v46, %v851_v38 }
 0x251   : > { %v1515_v39 = vld [vmem:[%s3380_s9 + $0x18] sm:$0xff] }
 0x2a4   : > { %v864_v40 = vpop.permute.xlu1 %863  ;;  %v866_v43 = vpop.permute.xlu0 %865 }
 0x2a5   : > { %2370 = vmatpush3.xpose.msk.msra.mxu1 %vm879_vm1, %v864_v40 }
 0x2a6   : > { %2374 = vmatprep.subr.mxu1 %v2745_v41 }
 0x2a8   : > { %v857_v42 = vpop.permute.xlu1 %856 }
 0x2a9   : > { %2372 = vmatmul.mubr.msk.f32.vlgmr.msra.gmra.mrb[4].mxu1 %vm879_vm1, %v857_v42 }
 0x2aa   : > { %2375 = vmatpush3.xpose.msk.msra.mxu1 %vm879_vm1, %v866_v43  ;;  %2376 = vmatprep.mubr.msk.f32.mxu1 %vm2744_vm0, %v2745_v41 }
 0x2ab   : > { %2379 = vmatprep.subr.mxu1 %v2745_v41 }
 0x2ac   : > { %v859_v44 = vpop.permute.xlu1 %858 }
 0x2ad   : > { %2377 = vmatmul.mubr.msk.f32.vlgmr.msra.gmra.mrb[6].mxu1 %vm879_vm1, %v859_v44 }
 0x2ae   : > { %2381 = vmatprep.mubr.msk.f32.mxu1 %vm2744_vm0, %v2745_v41 }
 0x2b0   : > { %v868_v45 = vpop.permute.xlu1 %867 }
 0x2b1   : > { %2380 = vmatpush3.xpose.msk.msra.mxu1 %vm879_vm1, %v868_v45 }
 0x2b2   : > { %2384 = vmatprep.subr.mxu1 %v2745_v41 }
 0x2b4   : > { %v861_v48 = vpop.permute.xlu1 %860 }
 0x2b5   : > { %2382 = vmatmul.mubr.msk.f32.vlgmr.msra.gmra.mrb[8].mxu1 %vm879_vm1, %v861_v48 }
 0x2b6   : > { %2385 = vmatpush3.msra.mxu1 %v852_v47  ;;  %2386 = vmatprep.mubr.msk.f32.mxu1 %vm2744_vm0, %v2745_v41 }
 0x2b7   : > { %2389 = vmatprep.subr.mxu1 %v2745_v41 }
 0x309   : > { %v950_v49 = vpop.f32.mrb[2].mxu1 }
 0x30a   : > { %v2368_v50 = vpop.f32.mrb[3].mxu1  ;;  %v1176_v51 = vsel %vm879_vm1, %v950_v49, -inf }
 0x30b   : > { %1177 = vmax.xlane.f32.xlu1 %v1176_v51 }
 0x37c   : > { %v1024_v52 = vpop.f32.mrb[4].mxu1 }
 0x37d   : > { %v2373_v53 = vpop.f32.mrb[5].mxu1  ;;  %v1179_v54 = vsel %vm879_vm1, %v1024_v52, -inf }
 0x37e   : > { %1180 = vmax.xlane.f32.xlu0 %v1179_v54 }
 0x380   : > { %v1098_v55 = vpop.f32.mrb[6].mxu1 }
 0x381   : > { %v2378_v56 = vpop.f32.mrb[7].mxu1  ;;  %v1182_v57 = vsel %vm879_vm1, %v1098_v55, -inf }
 0x382   : > { %1183 = vmax.xlane.f32.xlu1 %v1182_v57  ;;  %v2141_v56 = vld [vmem:[%s3381_s10] ss:$0 sm:$0xff] }
 0x388   : > { %v1172_v58 = vpop.f32.mrb[8].mxu1 }
 0x389   : > { %v2383_v59 = vpop.f32.mrb[9].mxu1  ;;  %v1185_v60 = vsel %vm879_vm1, %v1172_v58, -inf }
 0x38a   : > { %1186 = vmax.xlane.f32.xlu1 %v1185_v60 }
 0x398   : > { %v1178_v61 = vpop.xlane.xlu1 %1177 }
 0x399   : > { %v1188_v62 = vsub.f32 %v950_v49, %v1178_v61  ;;  %v1860_v61 = vld [vmem:[%s3384_s13 + $0x8] sm:$0xff] }
 0x39b   : > { %v1192_v63 = vmul.f32 1.442695, %v1188_v62  ;;  %v1861_v62 = vld [vmem:[%s3384_s13 + $0x10] sm:$0xff] }
 0x39d   : > { %2661 = vpow2.f32 %v1192_v63 }
 0x3a7   : > { %v2662_v1 = vpop.eup %2661 }
 0x3a8   : > { %v1200_v2 = vsel %vm879_vm1, %v2662_v1, 0.0 }
 0x3a9   : > { %1201 = vadd.xlane.f32.xlu0 %v1200_v2 }
 0x40b   : > { %v1181_v3 = vpop.xlane.xlu0 %1180 }
 0x40c   : > { %v1189_v5 = vsub.f32 %v1024_v52, %v1181_v3 }
 0x40e   : > { %v1194_v6 = vmul.f32 1.442695, %v1189_v5 }
 0x40f   : > { %v1184_v7 = vpop.xlane.xlu1 %1183 }
 0x410   : > { %2663 = vpow2.f32 %v1194_v6  ;;  %v1190_v8 = vsub.f32 %v1098_v55, %v1184_v7  ;;  %v1863_v7 = vld [vmem:[%s3384_s13 + $0x20] sm:$0xff] }
 0x412   : > { %v1196_v9 = vmul.f32 1.442695, %v1190_v8  ;;  %v1864_v8 = vld [vmem:[%s3384_s13 + $0x28] sm:$0xff] }
 0x414   : > { %2665 = vpow2.f32 %v1196_v9  ;;  %v2573_v9 = vpack.c.bf16 %v1864_v8, %v1863_v7 }
 0x417   : > { %v1187_v15 = vpop.xlane.xlu1 %1186 }
 0x418   : > { %v1191_v16 = vsub.f32 %v1172_v58, %v1187_v15  ;;  %v1869_v15 = vld [vmem:[%s3384_s13 + $0x50] sm:$0xff] }
 0x41a   : > { %v2664_v10 = vpop.eup %2663  ;;  %v1198_v17 = vmul.f32 1.442695, %v1191_v16 }
 0x41b   : > { %v1203_v11 = vsel %vm879_vm1, %v2664_v10, 0.0 }
 0x41c   : > { %1204 = vadd.xlane.f32.xlu1 %v1203_v11  ;;  %v1866_v11 = vld [vmem:[%s3384_s13 + $0x38] sm:$0xff] }
 0x41e   : > { %v2666_v12 = vpop.eup %2665 }
 0x41f   : > { %v1206_v13 = vsel %vm879_vm1, %v2666_v12, 0.0 }
 0x420   : > { %1207 = vadd.xlane.f32.xlu0 %v1206_v13  ;;  %v1867_v13 = vld [vmem:[%s3384_s13 + $0x40] sm:$0xff] }
 0x42d   : > { %873 = vrot.lane.b32.xlu1 %v852_v47, %s2746_s19  ;;  %s2749_s19 = smov [#allocation2]  }
 0x436   : > { %v1202_v14 = vpop.xlane.xlu0 %1201  ;;  %870 = vrot.lane.b32.xlu0 %v852_v47, %s2747_s0  ;;  %s537_s0 = sand.u32 1, %s2733_s25  }
 0x437   : > { %2667 = vrcp.f32 %v1202_v14  ;;  %v1868_v14 = vld [vmem:[%s3384_s13 + $0x48] sm:$0xff]  ;;  %s2042_s26 = scalar_lea.sflag [#allocation3], %s537_s0 }
 0x438   : > { %2669 = vpow2.f32 %v1198_v17  ;;  %v2579_v16 = vpack.c.bf16 %v1868_v14, %v1867_v13  ;;  %v1870_v17 = vld [vmem:[%s3384_s13 + $0x58] sm:$0xff] }
 0x441   : > { %v2668_v18 = vpop.eup %2667 }
 0x442   : > { %v1216_v19 = vmul.f32 %v2668_v18, %v2662_v1  ;;  %v2670_v20 = vpop.eup %2669  ;;  %v2582_v18 = vpack.c.bf16 %v1870_v17, %v1869_v15 }
 0x443   : > { %v1209_v21 = vsel %vm879_vm1, %v2670_v20, 0.0 }
 0x444   : > { %2387 = vmatmul.mubr.msk.f32.vlgmr.msra.gmra.mrb[10].mxu1 %vm879_vm1, %v1216_v19  ;;  %v1871_v19 = vld [vmem:[%s3384_s13 + $0x60] sm:$0xff] }
 0x445   : > { %2391 = vmatprep.mubr.msk.f32.mxu1 %vm2744_vm0, %v2745_v41 }
 0x451   : > { %1210 = vadd.xlane.f32.xlu1 %v1209_v21 }
 0x462   : > { %876 = vrot.lane.b32.xlu1 %v852_v47, %s2748_s20  ;;  %s2118_s20 = sshll.u32 %s537_s0, 3 }
 0x463   : > { %s539_s29 = scalar_lea.vmem [#allocation2], %s2118_s20  ;;  %s2683_s20 = sshll.u32 %s2749_s19, 4  ;;  %s2684_s20 = int_to_ptr.vmem [resolvable:$false] %s2683_s20 }
 0x464   : > { %s2055_s30 = sshll.u32 %s539_s29, 4  ;;  %s2685_s24 = scalar_lea.vmem %s2684_s20, 256  ;;  %s3331_s30 = int_to_ptr.vmem [resolvable:$true] %s2055_s30 }
 0x465   : > { %s2679_s28 = scalar_lea.vmem %s3331_s30, 128  ;;  %p2686_p0 = scmp.lt.s32.totalorder %s3331_s30, %s2684_s20 }
 0x466   : > { %p2680_p11 = scmp.ne.s32.totalorder %s3331_s30, %s2679_s28  ;;  %p2687_p1 = scmp.lt.s32.totalorder %s2685_s24, %s2679_s28 }
 0x468   : > { %p2681_p12 = pnand %p2680_p11, %p2878_p5  ;;  %p2688_p2 = por %p2687_p1, %p2686_p0 }
 0x46a   : > { %p2682_p13 = pneg %p2681_p12 }
 0x46c   : > { %p2689_p3 = pnand %p2688_p2, %p2682_p13 }
 0x4a9   : > { %v1205_v23 = vpop.xlane.xlu1 %1204 }
 0x4aa   : > { %2671 = vrcp.f32 %v1205_v23  ;;  %v1874_v23 = vld [vmem:[%s3384_s13 + $0x78] sm:$0xff] }
 0x4ad   : > { %v1208_v24 = vpop.xlane.xlu0 %1207  ;;  %v874_v28 = vpop.permute.xlu1 %873 }
 0x4ae   : > { %2673 = vrcp.f32 %v1208_v24  ;;  %v2588_v24 = vpack.c.bf16 %v1874_v23, %v1873_v22 }
 0x4b1   : > { %v871_v25 = vpop.permute.xlu0 %870 }
 0x4b2   : > { %2390 = vmatpush3.msra.mxu1 %v871_v25  ;;  %v1953_v25 = vld [vmem:[%s3386_s15] sm:$0xff] }
 0x4b3   : > { %2394 = vmatprep.subr.mxu1 %v2745_v41 }
 0x4b4   : > { %v2672_v26 = vpop.eup %2671 }
 0x4b5   : > { %v1217_v27 = vmul.f32 %v2672_v26, %v2664_v10  ;;  %v1865_v10 = vld [vmem:[%s3384_s13 + $0x30] sm:$0xff]  ;;  %v1954_v26 = vld [vmem:[%s3386_s15 + $0x8] sm:$0xff] }
 0x4b7   : > { %2392 = vmatmul.mubr.msk.f32.vlgmr.msra.gmra.mrb[12].mxu1 %vm879_vm1, %v1217_v27  ;;  %v1955_v27 = vld [vmem:[%s3386_s15 + $0x10] sm:$0xff] }
 0x4b8   : > { %v2674_v29 = vpop.eup %2673  ;;  %2395 = vmatpush3.msra.mxu1 %v874_v28  ;;  %2396 = vmatprep.mubr.msk.f32.mxu1 %vm2744_vm0, %v2745_v41  ;;  %v2591_v28 = vpack.c.bf16 %v1954_v26, %v1953_v25 }
 0x4b9   : > { %v1218_v30 = vmul.f32 %v2674_v29, %v2666_v12  ;;  %2399 = vmatprep.subr.mxu1 %v2745_v41  ;;  %v2576_v12 = vpack.c.bf16 %v1866_v11, %v1865_v10  ;;  %v1956_v29 = vld [vmem:[%s3386_s15 + $0x18] sm:$0xff] }
 0x4bb   : > { %2397 = vmatmul.mubr.msk.f32.vlgmr.msra.gmra.mrb[14].mxu1 %vm879_vm1, %v1218_v30  ;;  %v2594_v30 = vpack.c.bf16 %v1956_v29, %v1955_v27 }
 0x4bc   : > { %2401 = vmatprep.mubr.msk.f32.mxu1 %vm2744_vm0, %v2745_v41 }
 0x4de   : > { %v1211_v31 = vpop.xlane.xlu1 %1210 }
 0x4df   : > { %2675 = vrcp.f32 %v1211_v31  ;;  %v1957_v31 = vld [vmem:[%s3386_s15 + $0x20] sm:$0xff] }
 0x4e2   : > { %v877_v32 = vpop.permute.xlu1 %876 }
 0x4e3   : > { %2400 = vmatpush3.msra.mxu1 %v877_v32  ;;  %v1958_v32 = vld [vmem:[%s3386_s15 + $0x28] sm:$0xff] }
 0x4e4   : > { %2409 = vmatprep.subr.mxu1 %v2745_v41 }
 0x4e9   : > { %v2676_v33 = vpop.eup %2675 }
 0x4ea   : > { %v1219_v34 = vmul.f32 %v2676_v33, %v2670_v20  ;;  %v1872_v20 = vld [vmem:[%s3384_s13 + $0x68] sm:$0xff]  ;;  %v2597_v33 = vpack.c.bf16 %v1958_v32, %v1957_v31 }
 0x4eb   : > { %v2585_v21 = vpack.c.bf16 %v1872_v20, %v1871_v19 }
 0x4ec   : > { %2402 = vmatmul.mubr.msk.f32.vlgmr.msra.gmra.mrb[16].mxu1 %vm879_vm1, %v1219_v34  ;;  %v1959_v34 = vld [vmem:[%s3386_s15 + $0x30] sm:$0xff] }
 0x4ed   : > { %2411 = vmatprep.mubr.msk.f32.mxu1 %vm2744_vm0, %v2745_v41  ;;  %2410 = vmatpush3.msra.mxu1 %v1513_v35  ;;  %v1960_v35 = vld [vmem:[%s3386_s15 + $0x38] sm:$0xff] }
 0x4ee   : > { %2419 = vmatprep.subr.mxu1 %v2745_v41 }
 0x517   : > { %v1289_v37 = vpop.f32.mrb[10].mxu1 }
 0x518   : > { %v2388_v38 = vpop.f32.mrb[11].mxu1  ;;  %2407 = vmatmul.mubr.msk.f32.vlgmr.msra.gmra.mrb[4].mxu0 %vm879_vm1, %v1289_v37  ;;  %v1961_v37 = vld [vmem:[%s3386_s15 + $0x40] sm:$0xff] }
 0x519   : > { %2415 = vmatpush3.msra.mxu0 %v1514_v36  ;;  %2416 = vmatprep.mubr.msk.f32.mxu0 %vm2744_vm0, %v2745_v41  ;;  %v2600_v36 = vpack.c.bf16 %v1960_v35, %v1959_v34  ;;  %v1962_v38 = vld [vmem:[%s3386_s15 + $0x48] sm:$0xff] }
 0x51a   : > { %2566 = vmatprep.subr.bf16.mxu0 %v2743_v4 }
 0x58a   : > { %v1362_v40 = vpop.f32.mrb[12].mxu1 }
 0x58b   : > { %v2393_v42 = vpop.f32.mrb[13].mxu1  ;;  %2412 = vmatmul.mubr.msk.f32.vlgmr.msra.gmra.mrb[18].mxu1 %vm879_vm1, %v1362_v40  ;;  %v1963_v40 = vld [vmem:[%s3386_s15 + $0x50] sm:$0xff] }
 0x58c   : > { %2420 = vmatpush3.msra.mxu1 %v1515_v39  ;;  %2421 = vmatprep.mubr.msk.f32.mxu1 %vm2744_vm0, %v2745_v41  ;;  %v2603_v39 = vpack.c.bf16 %v1962_v38, %v1961_v37  ;;  %v1964_v42 = vld [vmem:[%s3386_s15 + $0x58] sm:$0xff] }
 0x58d   : > { %2590 = vmatprep.subr.bf16.mxu1 %v2743_v4 }
 0x58e   : > { %v1435_v43 = vpop.f32.mrb[14].mxu1 }
 0x58f   : > { %v2398_v44 = vpop.f32.mrb[15].mxu1  ;;  %2417 = vmatmul.mubr.msk.f32.vlgmr.msra.gmra.mrb[6].mxu0 %vm879_vm1, %v1435_v43  ;;  %v2606_v43 = vpack.c.bf16 %v1964_v42, %v1963_v40 }
 0x590   : > { %2456 = vmatprep.mubr.msk.f32.mxu0 %vm2744_vm0, %v2745_v41  ;;  %v1965_v44 = vld [vmem:[%s3386_s15 + $0x60] sm:$0xff] }
 0x5bf   : > { %v1508_v45 = vpop.f32.mrb[16].mxu1 }
 0x5c0   : > { %v2403_v46 = vpop.f32.mrb[17].mxu1  ;;  %2422 = vmatmul.mubr.msk.f32.vlgmr.msra.gmra.mrb[20].mxu1 %vm879_vm1, %v1508_v45  ;;  %v1966_v45 = vld [vmem:[%s3386_s15 + $0x68] sm:$0xff] }
 0x5c1   : > { %2491 = vmatprep.mubr.msk.f32.mxu1 %vm2744_vm0, %v2745_v41  ;;  %v1859_v41 = vld [vmem:[%s3384_s13] sm:$0xff]  ;;  %2592 = vmatpush3.bf16.msra.mxu1 %v2591_v28  ;;  %v2609_v46 = vpack.c.bf16 %v1966_v45, %v1965_v44 }
 0x5c2   : > { %v2567_v63 = vpack.c.bf16 %v1860_v61, %v1859_v41  ;;  %2593 = vmatprep.subr.bf16.mxu1 %v2743_v4  ;;  %v1968_v41 = vld [vmem:[%s3386_s15 + $0x78] sm:$0xff] }
 0x5c4   : > { %2568 = vmatpush3.bf16.msra.mxu0 %v2567_v63 }
 0x5c5   : > { %2569 = vmatprep.subr.bf16.mxu0 %v2743_v4  ;;  %2595 = vmatpush3.bf16.msra.mxu1 %v2594_v30 }
 0x5c6   : > { %2596 = vmatprep.subr.bf16.mxu1 %v2743_v4 }
 0x5c9   : > { %2598 = vmatpush3.bf16.msra.mxu1 %v2597_v33 }
 0x5ca   : > { %2599 = vmatprep.subr.bf16.mxu1 %v2743_v4 }
 0x5cd   : > { %2601 = vmatpush3.bf16.msra.mxu1 %v2600_v36 }
 0x5ce   : > { %2602 = vmatprep.subr.bf16.mxu1 %v2743_v4 }
 0x5d1   : > { %2604 = vmatpush3.bf16.msra.mxu1 %v2603_v39 }
 0x5d2   : > { %2605 = vmatprep.subr.bf16.mxu1 %v2743_v4 }
 0x5d5   : > { %2607 = vmatpush3.bf16.msra.mxu1 %v2606_v43 }
 0x5d6   : > { %2608 = vmatprep.subr.bf16.mxu1 %v2743_v4 }
 0x5d9   : > { %2610 = vmatpush3.bf16.msra.mxu1 %v2609_v46 }
 0x5da   : > { %2611 = vmatprep.subr.bf16.mxu1 %v2743_v4 }
 0x5eb   : > { %v1585_v47 = vpop.f32.mrb[4].mxu0 }
 0x5ec   : > { %v2408_v48 = vpop.f32.mrb[5].mxu0 }
 0x65e   : > { %v1658_v49 = vpop.f32.mrb[18].mxu1 }
 0x65f   : > { %v1808_v50 = vadd.f32 %v1658_v49, %v1585_v47  ;;  %v2413_v51 = vpop.f32.mrb[19].mxu1 }
 0x662   : > { %v1731_v52 = vpop.f32.mrb[6].mxu0 }
 0x663   : > { %v1809_v53 = vadd.f32 %v1808_v50, %v1731_v52  ;;  %v2418_v54 = vpop.f32.mrb[7].mxu0 }
 0x693   : > { %v1804_v55 = vpop.f32.mrb[20].mxu1 }
 0x694   : > { %v1810_v57 = vadd.f32 %v1809_v53, %v1804_v55  ;;  %v2423_v58 = vpop.f32.mrb[21].mxu1  ;;  %v2142_v55 = vld [vmem:[%s3382_s11] ss:$0 sm:$0xff] }
 0x696   : > { %v1818_v59 = vadd.f32 %v2141_v56, %v1810_v57 }
 0x698   : > { %v3187_v60 = vadd.f32 %v1818_v59, %v2893_v0  ;;  %v1862_v0 = vld [vmem:[%s3384_s13 + $0x18] sm:$0xff]  ;;  %v1967_v59 = vld [vmem:[%s3386_s15 + $0x70] sm:$0xff] }
 0x699   : > { %v2570_v1 = vpack.c.bf16 %v1862_v0, %v1861_v62  ;;  %v2612_v61 = vpack.c.bf16 %v1968_v41, %v1967_v59  ;;  %v2145_v62 = vld [vmem:[%s3385_s14] ss:$0 sm:$0xff] }
 0x69a   : > { %1822 = vadd.xlane.f32.xlu0 %v3187_v60 }
 0x69b   : > { %2571 = vmatpush3.bf16.msra.mxu0 %v2570_v1  ;;  %2613 = vmatpush3.bf16.msra.mxu1 %v2612_v61 }
 0x69c   : > { %2572 = vmatprep.subr.bf16.mxu0 %v2743_v4 }
 0x69f   : > { %2574 = vmatpush3.bf16.msra.mxu0 %v2573_v9 }
 0x6a0   : > { %2575 = vmatprep.subr.bf16.mxu0 %v2743_v4 }
 0x6a3   : > { %2577 = vmatpush3.bf16.msra.mxu0 %v2576_v12 }
 0x6a4   : > { %2578 = vmatprep.subr.bf16.mxu0 %v2743_v4 }
 0x6a7   : > { %2580 = vmatpush3.bf16.msra.mxu0 %v2579_v16 }
 0x6a8   : > { %2581 = vmatprep.subr.bf16.mxu0 %v2743_v4 }
 0x6ab   : > { %2583 = vmatpush3.bf16.msra.mxu0 %v2582_v18 }
 0x6ac   : > { %2584 = vmatprep.subr.bf16.mxu0 %v2743_v4 }
 0x6af   : > { %2586 = vmatpush3.bf16.msra.mxu0 %v2585_v21 }
 0x6b0   : > { %2587 = vmatprep.subr.bf16.mxu0 %v2743_v4  ;;  %v2143_v4 = vld [vmem:[%s3383_s12] ss:$0 sm:$0xff] }
 0x6b3   : > { %2589 = vmatpush3.bf16.msra.mxu0 %v2588_v24 }
 0x727   : > { %v1823_v2 = vpop.xlane.xlu0 %1822 }
 0x728   : > { %v3204_v3 = vmul.f32 0.03125, %v1823_v2 }
 0x72a   : > { %v3208_v5 = vsub.f32 %v3187_v60, %v3204_v3  ;;  %v1829_v47 = vmul.f32 %v3204_v3, %v3204_v3  ;;  %v2144_v3 = vld [vmem:[%s3387_s16] ss:$0 sm:$0xff] }
 0x72c   : > { %v1826_v6 = vmul.f32 %v3208_v5, %v3208_v5  ;;  %v1830_v48 = vmul.f32 96.0, %v1829_v47 }
 0x72e   : > { %1827 = vadd.xlane.f32.xlu1 %v1826_v6 }
 0x7bb   : > { %v1828_v49 = vpop.xlane.xlu1 %1827 }
 0x7bc   : > { %v1831_v50 = vsub.f32 %v1828_v49, %v1830_v48 }
 0x7be   : > { %v1832_v51 = vmul.f32 0.03125, %v1831_v50 }
 0x7c0   : > { %v1833_v52 = vmax.f32 %v1832_v51, 0.0 }
 0x7c2   : > { %v1834_v53 = vadd.f32 1e-05, %v1833_v52 }
 0x7c4   : > { %2677 = vrsqrt.f32 %v1834_v53 }
 0x7ce   : > { %v2678_v54 = vpop.eup %2677 }
 0x7cf   : > { %v1836_v56 = vmul.f32 %v2678_v54, %v3208_v5  ;;  %v1858_v5 = vadd.f32 %v2144_v3, %v3187_v60 }
 0x7d1   : > { %v1843_v57 = vmul.f32 %v2142_v55, %v1836_v56 }
 0x7d3   : > { %v1850_v58 = vadd.f32 %v2143_v4, %v1843_v57 }
 0x7d5   : > { %2457 = vmatmul.mubr.f32.vlgmr.msra.gmra.mrb[8].mxu0 %v1850_v58 }
 0x8a8   : > { %v1948_v63 = vpop.f32.mrb[8].mxu0 }
 0x8a9   : > { %v1949_v0 = vadd.f32 %v2145_v62, %v1948_v63  ;;  %v2458_v1 = vpop.f32.mrb[9].mxu0 }
 0x8ab   : > { %v1952_v2 = vmax.f32 %v1949_v0, 0.0 }
 0x8ad   : > { %2492 = vmatmul.mubr.f32.vlgmr.msra.gmra.mrb[22].mxu1 %v1952_v2 }
 0x980   : > { %v2035_v6 = vpop.f32.mrb[22].mxu1 }
 0x981   : > { %v2039_v7 = vadd.f32 %v2035_v6, %v1858_v5  ;;  %v2493_v8 = vpop.f32.mrb[23].mxu1 }
 0x983   : > { %2040 = vst [vmem:[%s539_s29] sm:$0xff] %v2039_v7 }
 0x984   : > { %2692 = shalt.err (!%p2689_p3)
}
 0x985   : > { %s2693_s0 = scalar_lea.hbm %s3329_s22, 128  ;;  %s2697_s29 = scalar_lea.hbm %s3388_s17, 256 }
 0x986   : > { %p2694_p4 = scmp.ne.s32.totalorder %s3329_s22, %s2693_s0  ;;  %p2698_p9 = scmp.lt.u32.totalorder %s3329_s22, %s3388_s17 }
 0x987   : > { %p2699_p10 = scmp.lt.u32.totalorder %s2697_s29, %s2693_s0  ;;  %p2701_p12 = scmp.lt.u32.totalorder %s2693_s0, %s3329_s22 }
 0x988   : > { %p2695_p7 = pnand %p2694_p4, %p2878_p5 }
 0x989   : > { %p2700_p11 = por %p2699_p10, %p2698_p9 }
 0x98a   : > { %p2696_p8 = pneg %p2695_p7 }
 0x98b   : > { %p2702_p13 = por %p2701_p12, %p2700_p11 }
 0x98d   : > { %p2703_p0 = pnand %p2702_p13, %p2696_p8 }
 0x98f   : > { %2706 = shalt.err (!%p2703_p0)
}
 0x990   : > { %2614 = dma.vmem_to_hbm [thread:$0]  (%p2878_p5), %s3331_s30, 128, %s3329_s22, %s2042_s26  }
 0x991 PF: > { %s3407_s28 = sld [smem:[#allocation7_spill]]  ;;  %s3408_s19 = sld [smem:[#allocation5_spill]] }
 0x997   : > { %p2620_p1 = scmp.ge.s32.totalorder %s3407_s28, 2  ;;  %s2067_s24 = sand.u32 1, %s3408_s19  }
 0x998   : > { %s2068_s27 = scalar_lea.sflag [#allocation3], %s2067_s24 }
 0x999   : > { %p2617_p2 = pnand %p2620_p1, %p2882_p6 }
 0x99b   : > { %2724 = dma.done.wait (!%p2617_p2), %s2068_s27, 128  }
 0x99c   : > { %2726 = vsyncadd (!%p2617_p2), %s2068_s27, 4294967168  ;;  %s3410_s27 = sld [smem:[#allocation8_spill]]  ;;  %s3411_s0 = sld [smem:[#allocation6_spill]] }
 0x99d   : > { %s3412_s26 = sld [smem:[#allocation9_spill]]  ;;  %s3413_s24 = smov %s2733_s25 }
 0x9a2   : > { %p27_p3 = scmp.ge.s32.totalorder %s3410_s27, 4   ;;  %s3414_s25 = smov %s3411_s0 }
 0x9a4   :  { %29 = sbr.rel (!%p27_p3) target bundleno = 6 (0x6), region = 123 }
 0x9ab   :  { %2073 = vsyncpa [#allocation3], 1 }
 0x9ac   :  { %2075 = vsyncpa [#allocation3 + $0x1], 1 }

// kernel: tpu_custom_call.1
= control target key start
LH: loop header
LB: loop body
LE: loop exit
PB: predicated region body
PF: predicated region fallthrough
CT: control target
= control target key end

     0   :  { %s3371_s0 = inlined_call_operand.vmem [shape: f32[16,128], index: 0, kind: input, shape index: {}]   ;;  %s3372_s1 = inlined_call_operand.vmem [shape: f32[1,128], index: 1, kind: input, shape index: {}]   ;;  %s3373_s2 = inlined_call_operand.vmem [shape: f32[1,128], index: 2, kind: input, shape index: {}]   ;;  %s3374_s3 = inlined_call_operand.vmem [shape: f32[128,32], index: 3, kind: input, shape index: {}]   ;;  %s3375_s4 = inlined_call_operand.vmem [shape: f32[1,32], index: 4, kind: input, shape index: {}]   ;;  %s3376_s5 = inlined_call_operand.vmem [shape: f32[128,32], index: 5, kind: input, shape index: {}]   ;;  %s3377_s6 = inlined_call_operand.vmem [shape: f32[1,32], index: 6, kind: input, shape index: {}]   ;;  %s3378_s7 = inlined_call_operand.vmem [shape: f32[128,32], index: 7, kind: input, shape index: {}]   ;;  %s3379_s8 = inlined_call_operand.vmem [shape: f32[1,32], index: 8, kind: input, shape index: {}]   ;;  %s3380_s9 = inlined_call_operand.vmem [shape: f32[4,8,128], index: 9, kind: input, shape index: {}]   ;;  %s3381_s10 = inlined_call_operand.vmem [shape: f32[1,128], index: 10, kind: input, shape index: {}]   ;;  %s3382_s11 = inlined_call_operand.vmem [shape: f32[1,128], index: 11, kind: input, shape index: {}]   ;;  %s3383_s12 = inlined_call_operand.vmem [shape: f32[1,128], index: 12, kind: input, shape index: {}]   ;;  %s3384_s13 = inlined_call_operand.vmem [shape: f32[128,128], index: 13, kind: input, shape index: {}]   ;;  %s3385_s14 = inlined_call_operand.vmem [shape: f32[1,128], index: 14, kind: input, shape index: {}]   ;;  %s3386_s15 = inlined_call_operand.vmem [shape: f32[128,128], index: 15, kind: input, shape index: {}]   ;;  %s3387_s16 = inlined_call_operand.vmem [shape: f32[1,128], index: 16, kind: input, shape index: {}]   ;;  %s3388_s17 = inlined_call_operand.hbm [shape: f32[16,128], index: 17, kind: output, shape index: {}]  }
   0x1   :  { %3395 = sst [smem:[#allocation11_spill]] %s3371_s0 }
   0x2   :  { %3396 = sst [smem:[#allocation12_spill]] %s3372_s1 }
   0x3   :  { %22 = vsyncpa [#allocation3], 0 }
   0x4   :  { %24 = vsyncpa [#allocation3 + $0x1], 0  ;;  %s2840_s24 = smov 0   ;;  %s2842_s25 = smov 0  }
   0x5   :  { %s2844_s26 = smov 0   ;;  %s2846_s27 = smov 0  }
   0x6 LB: > { %3397 = sst [smem:[#allocation5_spill]] %s2729_s24  ;;  %s2861_s28 = sadd.s32 4294967295, %s2741_s27   ;;  %s2741_s27 = sphi %s2846_s27, %s3410_s27   ;;  %s2737_s26 = sphi %s2844_s26, %s3412_s26   ;;  %s2733_s25 = sphi %s2842_s25, %s3414_s25   ;;  %s2729_s24 = sphi %s2840_s24, %s3413_s24  }
   0x7   : > { %3398 = sst [smem:[#allocation6_spill]] %s2737_s26  ;;  %s2114_s29 = sadd.s32 4294967294, %s2741_s27  }
   0x8   : > { %3399 = sst [smem:[#allocation7_spill]] %s2741_s27  ;;  %s2865_s0 = sadd.s32 1, %s2741_s27  }
   0x9   : > { %3400 = sst [smem:[#allocation8_spill]] %s2865_s0  ;;  %s399_s30 = sadd.s32 1, %s2737_s26 }
   0xa   : > { %s396_s18 = ssub.s32 %s2741_s27, %s2865_s0  ;;  %p409_p0 = scmp.ne.s32.totalorder %s2737_s26, %s2733_s25 }
   0xb   : > { %p397_p1 = scmp.eq.s32.totalorder %s396_s18, 0  ;;  %p410_p2 = scmp.eq.s32.totalorder %s2861_s28, 1 }
   0xc   : > { %p415_p3 = scmp.ne.s32.totalorder %s2733_s25, %s2729_s24  ;;  %p416_p4 = scmp.eq.s32.totalorder %s2114_s29, 1 }
   0xd   : > { %s2876_s19 = scalar_select %p397_p1, %s2737_s26, %s399_s30  }
   0xe   : > { %p2878_p5 = por %p410_p2, %p409_p0  ;;  %p2882_p6 = por %p416_p4, %p415_p3 }
   0xf   : > { %3401 = sst [smem:[#allocation9_spill]] %s2876_s19  ;;  %p2117_p7 = scmp.ge.s32.totalorder %s2741_s27, 1 }
  0x10   : > { %s3403_s20 = scalar_select %p2882_p6, 1, 0 }
  0x11   : > { %p489_p8 = scmp.lt.s32.totalorder %s2741_s27, 3 }
  0x12   : > { %3404 = sst [smem:[#allocation10_spill]] %s3403_s20 }
  0x13   : > { %p490_p9 = pnand %p2117_p7, %p489_p8 }
  0x14   : > { %p540_p10 = scmp.lt.s32.totalorder (!%p490_p9), %s2861_s28, 1  ;;  %s3405_s30 = sld [smem:[#allocation11_spill]] (!%p490_p9)  ;;  %v576_v1 = vld [vmem:[%s3374_s3] sm:$0xff] (!%p490_p9)  ;;  %v577_v2 = vld [vmem:[%s3374_s3 + $0x8] sm:$0xff] (!%p490_p9)  ;;  %v2743_v4 = vmov (!%p490_p9), 0.0|0.0   ;;  %v578_v7 = vld [vmem:[%s3374_s3 + $0x10] sm:$0xff] (!%p490_p9) }
  0x15   : > { %493 = sbr.rel (%p490_p9) target bundleno = 2449 (0x991), region = 88  ;;  %v669_v3 = vld [vmem:[%s3376_s5] sm:$0xff] (!%p490_p9)  ;;  %2494 = vmatprep.subr.bf16.mxu0 (!%p490_p9), %v2743_v4  ;;  %v2495_v5 = vpack.c.bf16 (!%p490_p9), %v577_v2, %v576_v1  ;;  %2518 = vmatprep.subr.bf16.mxu1 (!%p490_p9), %v2743_v4  ;;  %v670_v6 = vld [vmem:[%s3376_s5 + $0x8] sm:$0xff] (!%p490_p9)  ;;  %v579_v8 = vld [vmem:[%s3374_s3 + $0x18] sm:$0xff] (!%p490_p9)  ;;  %vm2744_vm0 = vmmov (!%p490_p9), 0   ;;  %v2745_v41 = vmov (!%p490_p9), 0.0  }
  0x16   : > { %v2519_v9 = vpack.c.bf16 (!%p490_p9), %v670_v6, %v669_v3  ;;  %v671_v10 = vld [vmem:[%s3376_s5 + $0x10] sm:$0xff] (!%p490_p9)  ;;  %v672_v11 = vld [vmem:[%s3376_s5 + $0x18] sm:$0xff] (!%p490_p9)  ;;  %v2498_v12 = vpack.c.bf16 (!%p490_p9), %v579_v8, %v578_v7  ;;  %v580_v18 = vld [vmem:[%s3374_s3 + $0x20] sm:$0xff] (!%p490_p9)  ;;  %2291 = vmatprep.mubr.msk.f32.mxu0 (!%p490_p9), %vm2744_vm0, %v2745_v41  ;;  %2326 = vmatprep.mubr.msk.f32.mxu1 (!%p490_p9), %vm2744_vm0, %v2745_v41  ;;  %vm879_vm1 = vcmask (!%p490_p9), 64512   ;;  %s2746_s19 = smov (!%p490_p9), 112   ;;  %s2747_s0 = smov (!%p490_p9), 120  }
  0x17   : > { %2496 = vmatpush3.bf16.msra.mxu0 (!%p490_p9), %v2495_v5  ;;  %v2522_v13 = vpack.c.bf16 (!%p490_p9), %v672_v11, %v671_v10  ;;  %v581_v19 = vld [vmem:[%s3374_s3 + $0x28] sm:$0xff] (!%p490_p9)  ;;  %v673_v21 = vld [vmem:[%s3376_s5 + $0x20] sm:$0xff] (!%p490_p9)  ;;  %v582_v24 = vld [vmem:[%s3374_s3 + $0x30] sm:$0xff] (!%p490_p9)  ;;  %s2748_s20 = smov (!%p490_p9), 104   ;;  %s2147_s23 = sshll.u32 (!%p490_p9), %s2861_s28, 7 }
  0x18   : > { %2520 = vmatpush3.bf16.msra.mxu1 (!%p490_p9), %v2519_v9  ;;  %2497 = vmatprep.subr.bf16.mxu0 (!%p490_p9), %v2743_v4  ;;  %v2501_v20 = vpack.c.bf16 (!%p490_p9), %v581_v19, %v580_v18  ;;  %v674_v22 = vld [vmem:[%s3376_s5 + $0x28] sm:$0xff] (!%p490_p9)  ;;  %v583_v25 = vld [vmem:[%s3374_s3 + $0x38] sm:$0xff] (!%p490_p9)  ;;  %v675_v27 = vld [vmem:[%s3376_s5 + $0x30] sm:$0xff] (!%p490_p9) }
  0x19   : > { %2521 = vmatprep.subr.bf16.mxu1 (!%p490_p9), %v2743_v4  ;;  %v2525_v23 = vpack.c.bf16 (!%p490_p9), %v674_v22, %v673_v21  ;;  %v2504_v26 = vpack.c.bf16 (!%p490_p9), %v583_v25, %v582_v24  ;;  %v676_v28 = vld [vmem:[%s3376_s5 + $0x38] sm:$0xff] (!%p490_p9)  ;;  %v584_v30 = vld [vmem:[%s3374_s3 + $0x40] sm:$0xff] (!%p490_p9)  ;;  %v585_v31 = vld [vmem:[%s3374_s3 + $0x48] sm:$0xff] (!%p490_p9) }
  0x1a   : > { %v2528_v29 = vpack.c.bf16 (!%p490_p9), %v676_v28, %v675_v27  ;;  %v2507_v32 = vpack.c.bf16 (!%p490_p9), %v585_v31, %v584_v30  ;;  %v677_v33 = vld [vmem:[%s3376_s5 + $0x40] sm:$0xff] (!%p490_p9)  ;;  %v678_v34 = vld [vmem:[%s3376_s5 + $0x48] sm:$0xff] (!%p490_p9)  ;;  %v586_v36 = vld [vmem:[%s3374_s3 + $0x50] sm:$0xff] (!%p490_p9) }
  0x1b   : > { %2499 = vmatpush3.bf16.msra.mxu0 (!%p490_p9), %v2498_v12  ;;  %v2531_v35 = vpack.c.bf16 (!%p490_p9), %v678_v34, %v677_v33  ;;  %v587_v37 = vld [vmem:[%s3374_s3 + $0x58] sm:$0xff] (!%p490_p9)  ;;  %v679_v38 = vld [vmem:[%s3376_s5 + $0x50] sm:$0xff] (!%p490_p9)  ;;  %v588_v43 = vld [vmem:[%s3374_s3 + $0x60] sm:$0xff] (!%p490_p9) }
  0x1c   : > { %s541_s21 = scalar_select %p540_p10, %s2861_s28, 1  ;;  %2523 = vmatpush3.bf16.msra.mxu1 %v2522_v13  ;;  %2500 = vmatprep.subr.bf16.mxu0 %v2743_v4  ;;  %v2510_v39 = vpack.c.bf16 %v587_v37, %v586_v36  ;;  %v680_v40 = vld [vmem:[%s3376_s5 + $0x58] sm:$0xff]  ;;  %v589_v44 = vld [vmem:[%s3374_s3 + $0x68] sm:$0xff]  ;;  %v681_v45 = vld [vmem:[%s3376_s5 + $0x60] sm:$0xff] }
  0x1d   : > { %2524 = vmatprep.subr.bf16.mxu1 %v2743_v4  ;;  %v2534_v42 = vpack.c.bf16 %v680_v40, %v679_v38  ;;  %v682_v46 = vld [vmem:[%s3376_s5 + $0x68] sm:$0xff]  ;;  %v2513_v47 = vpack.c.bf16 %v589_v44, %v588_v43  ;;  %v590_v49 = vld [vmem:[%s3374_s3 + $0x70] sm:$0xff]  ;;  %v591_v50 = vld [vmem:[%s3374_s3 + $0x78] sm:$0xff] }
  0x1e   : > { %s2119_s22 = sshll.u32 %s541_s21, 3  ;;  %v2537_v48 = vpack.c.bf16 %v682_v46, %v681_v45  ;;  %v683_v51 = vld [vmem:[%s3376_s5 + $0x70] sm:$0xff]  ;;  %v684_v52 = vld [vmem:[%s3376_s5 + $0x78] sm:$0xff]  ;;  %v2516_v53 = vpack.c.bf16 %v591_v50, %v590_v49  ;;  %s3406_s21 = sld [smem:[#allocation12_spill]]  ;;  %v762_v2 = vld [vmem:[%s3378_s7] sm:$0xff] }
  0x1f   : > { %s543_s18 = scalar_lea.vmem %s3405_s30, %s2119_s22  ;;  %2502 = vmatpush3.bf16.msra.mxu0 %v2501_v20  ;;  %v2540_v54 = vpack.c.bf16 %v684_v52, %v683_v51  ;;  %v763_v3 = vld [vmem:[%s3378_s7 + $0x8] sm:$0xff]  ;;  %v2121_v5 = vld [vmem:[%s3373_s2] ss:$0 sm:$0xff]  ;;  %v764_v9 = vld [vmem:[%s3378_s7 + $0x10] sm:$0xff]  ;;  %s3329_s22 = scalar_lea.hbm %s3388_s17, %s2147_s23 }
  0x20   : > { %v2893_v0 = vld [vmem:[%s543_s18] sm:$0xff]  ;;  %2526 = vmatpush3.bf16.msra.mxu1 %v2525_v23  ;;  %2503 = vmatprep.subr.bf16.mxu0 %v2743_v4  ;;  %v2543_v7 = vpack.c.bf16 %v763_v3, %v762_v2  ;;  %v765_v10 = vld [vmem:[%s3378_s7 + $0x18] sm:$0xff]  ;;  %v767_v13 = vld [vmem:[%s3378_s7 + $0x28] sm:$0xff] }
  0x21   : > { %547 = vadd.xlane.f32.xlu0 %v2893_v0  ;;  %2527 = vmatprep.subr.bf16.mxu1 %v2743_v4  ;;  %v2546_v11 = vpack.c.bf16 %v765_v10, %v764_v9  ;;  %v766_v12 = vld [vmem:[%s3378_s7 + $0x20] sm:$0xff]  ;;  %v771_v19 = vld [vmem:[%s3378_s7 + $0x48] sm:$0xff]  ;;  %v772_v21 = vld [vmem:[%s3378_s7 + $0x50] sm:$0xff] }
  0x22   : > { %v770_v18 = vld [vmem:[%s3378_s7 + $0x40] sm:$0xff]  ;;  %v773_v22 = vld [vmem:[%s3378_s7 + $0x58] sm:$0xff]  ;;  %v775_v25 = vld [vmem:[%s3378_s7 + $0x68] sm:$0xff] }
  0x23   : > { %2505 = vmatpush3.bf16.msra.mxu0 %v2504_v26  ;;  %v2555_v20 = vpack.c.bf16 %v771_v19, %v770_v18  ;;  %v2558_v23 = vpack.c.bf16 %v773_v22, %v772_v21  ;;  %v774_v24 = vld [vmem:[%s3378_s7 + $0x60] sm:$0xff]  ;;  %v776_v27 = vld [vmem:[%s3378_s7 + $0x70] sm:$0xff]  ;;  %v777_v28 = vld [vmem:[%s3378_s7 + $0x78] sm:$0xff] }
  0x24   : > { %2529 = vmatpush3.bf16.msra.mxu1 %v2528_v29  ;;  %2506 = vmatprep.subr.bf16.mxu0 %v2743_v4  ;;  %v2120_v63 = vld [vmem:[%s3406_s21] ss:$0 sm:$0xff]  ;;  %v2561_v26 = vpack.c.bf16 %v775_v25, %v774_v24  ;;  %v2564_v29 = vpack.c.bf16 %v777_v28, %v776_v27 }
  0x25   : > { %2530 = vmatprep.subr.bf16.mxu1 %v2743_v4  ;;  %v2123_v30 = vld [vmem:[%s3377_s6] ss:$0 sm:$0xff] }
  0x26   : > { %v2122_v36 = vld [vmem:[%s3375_s4] ss:$0 sm:$0xff] }
  0x27   : > { %2508 = vmatpush3.bf16.msra.mxu0 %v2507_v32  ;;  %v2124_v46 = vld [vmem:[%s3379_s8] ss:$0 sm:$0xff] }
  0x28   : > { %2532 = vmatpush3.bf16.msra.mxu1 %v2531_v35  ;;  %2509 = vmatprep.subr.bf16.mxu0 %v2743_v4  ;;  %v1512_v22 = vld [vmem:[%s3380_s9] sm:$0xff] }
  0x29   : > { %2533 = vmatprep.subr.bf16.mxu1 %v2743_v4 }
  0x2b   : > { %2511 = vmatpush3.bf16.msra.mxu0 %v2510_v39 }
  0x2c   : > { %2535 = vmatpush3.bf16.msra.mxu1 %v2534_v42  ;;  %2512 = vmatprep.subr.bf16.mxu0 %v2743_v4 }
  0x2d   : > { %2536 = vmatprep.subr.bf16.mxu1 %v2743_v4 }
  0x2f   : > { %2514 = vmatpush3.bf16.msra.mxu0 %v2513_v47 }
  0x30   : > { %2538 = vmatpush3.bf16.msra.mxu1 %v2537_v48  ;;  %2515 = vmatprep.subr.bf16.mxu0 %v2743_v4 }
  0x31   : > { %2539 = vmatprep.subr.bf16.mxu1 %v2743_v4 }
  0x33   : > { %2517 = vmatpush3.bf16.msra.mxu0 %v2516_v53 }
  0x34   : > { %2541 = vmatpush3.bf16.msra.mxu1 %v2540_v54  ;;  %2542 = vmatprep.subr.bf16.mxu0 %v2743_v4 }
  0x35   : > { %2364 = vmatprep.subr.mxu1 %v2745_v41 }
  0xae   : > { %v548_v14 = vpop.xlane.xlu0 %547 }
  0xaf   : > { %v2926_v15 = vmul.f32 0.03125, %v548_v14  ;;  %v2549_v14 = vpack.c.bf16 %v767_v13, %v766_v12 }
  0xb1   : > { %v2930_v16 = vsub.f32 %v2893_v0, %v2926_v15  ;;  %v554_v55 = vmul.f32 %v2926_v15, %v2926_v15  ;;  %v768_v15 = vld [vmem:[%s3378_s7 + $0x30] sm:$0xff] }
  0xb3   : > { %v551_v17 = vmul.f32 %v2930_v16, %v2930_v16  ;;  %v555_v56 = vmul.f32 96.0, %v554_v55 }
  0xb5   : > { %552 = vadd.xlane.f32.xlu0 %v551_v17 }
 0x142   : > { %v553_v57 = vpop.xlane.xlu0 %552 }
 0x143   : > { %v556_v58 = vsub.f32 %v553_v57, %v555_v56 }
 0x145   : > { %v557_v59 = vmul.f32 0.03125, %v556_v58 }
 0x147   : > { %v558_v60 = vmax.f32 %v557_v59, 0.0 }
 0x149   : > { %v559_v61 = vadd.f32 1e-05, %v558_v60 }
 0x14b   : > { %2659 = vrsqrt.f32 %v559_v61 }
 0x155   : > { %v2660_v62 = vpop.eup %2659 }
 0x156   : > { %v561_v1 = vmul.f32 %v2660_v62, %v2930_v16  ;;  %v769_v16 = vld [vmem:[%s3378_s7 + $0x38] sm:$0xff] }
 0x157   : > { %v2552_v17 = vpack.c.bf16 %v769_v16, %v768_v15 }
 0x158   : > { %v568_v6 = vmul.f32 %v2120_v63, %v561_v1 }
 0x15a   : > { %v575_v8 = vadd.f32 %v2121_v5, %v568_v6 }
 0x15c   : > { %2292 = vmatmul.mubr.f32.vlgmr.msra.gmra.mrb[0].mxu0 %v575_v8  ;;  %2327 = vmatmul.mubr.f32.vlgmr.msra.gmra.mrb[0].mxu1 %v575_v8 }
 0x15d   : > { %2544 = vmatpush3.bf16.msra.mxu0 %v2543_v7  ;;  %2361 = vmatprep.mubr.msk.f32.mxu0 %vm2744_vm0, %v2745_v41 }
 0x15e   : > { %2545 = vmatprep.subr.bf16.mxu0 %v2743_v4  ;;  %2366 = vmatprep.mubr.msk.f32.mxu1 %vm2744_vm0, %v2745_v41 }
 0x161   : > { %2547 = vmatpush3.bf16.msra.mxu0 %v2546_v11 }
 0x162   : > { %2548 = vmatprep.subr.bf16.mxu0 %v2743_v4 }
 0x165   : > { %2550 = vmatpush3.bf16.msra.mxu0 %v2549_v14 }
 0x166   : > { %2551 = vmatprep.subr.bf16.mxu0 %v2743_v4 }
 0x169   : > { %2553 = vmatpush3.bf16.msra.mxu0 %v2552_v17 }
 0x16a   : > { %2554 = vmatprep.subr.bf16.mxu0 %v2743_v4 }
 0x16d   : > { %2556 = vmatpush3.bf16.msra.mxu0 %v2555_v20 }
 0x16e   : > { %2557 = vmatprep.subr.bf16.mxu0 %v2743_v4 }
 0x171   : > { %2559 = vmatpush3.bf16.msra.mxu0 %v2558_v23 }
 0x172   : > { %2560 = vmatprep.subr.bf16.mxu0 %v2743_v4 }
 0x175   : > { %2562 = vmatpush3.bf16.msra.mxu0 %v2561_v26 }
 0x176   : > { %2563 = vmatprep.subr.bf16.mxu0 %v2743_v4 }
 0x179   : > { %2565 = vmatpush3.bf16.msra.mxu0 %v2564_v29 }
 0x17a   : > { %2404 = vmatprep.subr.mxu0 %v2745_v41 }
 0x17c   : > { %2362 = vmatmul.mubr.f32.vlgmr.msra.gmra.mrb[2].mxu0 %v575_v8 }
 0x17d   : > { %2406 = vmatprep.mubr.msk.f32.mxu0 %vm2744_vm0, %v2745_v41  ;;  %2405 = vmatpush3.msra.mxu0 %v1512_v22  ;;  %v1873_v22 = vld [vmem:[%s3384_s13 + $0x70] sm:$0xff] }
 0x17e   : > { %2414 = vmatprep.subr.mxu0 %v2745_v41 }
 0x22f   : > { %v665_v31 = vpop.f32.mrb[0].mxu0  ;;  %v758_v32 = vpop.f32.mrb[0].mxu1 }
 0x230   : > { %v759_v33 = vadd.f32 %v2123_v30, %v758_v32  ;;  %v2293_v34 = vpop.f32.mrb[1].mxu0  ;;  %v2328_v35 = vpop.f32.mrb[1].mxu1  ;;  %v666_v37 = vadd.f32 %v2122_v36, %v665_v31  ;;  %v1514_v36 = vld [vmem:[%s3380_s9 + $0x10] sm:$0xff] }
 0x231   : > { %v1513_v35 = vld [vmem:[%s3380_s9 + $0x8] sm:$0xff] }
 0x232   : > { %865 = vrot.lane.b32.xlu0 %v759_v33, %s2746_s19  ;;  %863 = vrot.lane.b32.xlu1 %v759_v33, %s2747_s0 }
 0x233   : > { %2365 = vmatpush3.xpose.msk.msra.mxu1 %vm879_vm1, %v759_v33 }
 0x234   : > { %2369 = vmatprep.subr.mxu1 %v2745_v41 }
 0x236   : > { %2367 = vmatmul.mubr.msk.f32.vlgmr.msra.gmra.mrb[2].mxu1 %vm879_vm1, %v666_v37  ;;  %856 = vrot.lane.b32.xlu1 %v666_v37, %s2747_s0 }
 0x237   : > { %2371 = vmatprep.mubr.msk.f32.mxu1 %vm2744_vm0, %v2745_v41 }
 0x23a   : > { %858 = vrot.lane.b32.xlu1 %v666_v37, %s2746_s19 }
 0x23e   : > { %867 = vrot.lane.b32.xlu1 %v759_v33, %s2748_s20 }
 0x242   : > { %860 = vrot.lane.b32.xlu1 %v666_v37, %s2748_s20 }
 0x24f   : > { %v851_v38 = vpop.f32.mrb[2].mxu0 }
 0x250   : > { %v2363_v39 = vpop.f32.mrb[3].mxu0  ;;  %v852_v47 = vadd.f32 %v2124_v46, %v851_v38 }
 0x251   : > { %v1515_v39 = vld [vmem:[%s3380_s9 + $0x18] sm:$0xff] }
 0x2a4   : > { %v864_v40 = vpop.permute.xlu1 %863  ;;  %v866_v43 = vpop.permute.xlu0 %865 }
 0x2a5   : > { %2370 = vmatpush3.xpose.msk.msra.mxu1 %vm879_vm1, %v864_v40 }
 0x2a6   : > { %2374 = vmatprep.subr.mxu1 %v2745_v41 }
 0x2a8   : > { %v857_v42 = vpop.permute.xlu1 %856 }
 0x2a9   : > { %2372 = vmatmul.mubr.msk.f32.vlgmr.msra.gmra.mrb[4].mxu1 %vm879_vm1, %v857_v42 }
 0x2aa   : > { %2375 = vmatpush3.xpose.msk.msra.mxu1 %vm879_vm1, %v866_v43  ;;  %2376 = vmatprep.mubr.msk.f32.mxu1 %vm2744_vm0, %v2745_v41 }
 0x2ab   : > { %2379 = vmatprep.subr.mxu1 %v2745_v41 }
 0x2ac   : > { %v859_v44 = vpop.permute.xlu1 %858 }
 0x2ad   : > { %2377 = vmatmul.mubr.msk.f32.vlgmr.msra.gmra.mrb[6].mxu1 %vm879_vm1, %v859_v44 }
 0x2ae   : > { %2381 = vmatprep.mubr.msk.f32.mxu1 %vm2744_vm0, %v2745_v41 }
 0x2b0   : > { %v868_v45 = vpop.permute.xlu1 %867 }
 0x2b1   : > { %2380 = vmatpush3.xpose.msk.msra.mxu1 %vm879_vm1, %v868_v45 }
 0x2b2   : > { %2384 = vmatprep.subr.mxu1 %v2745_v41 }
 0x2b4   : > { %v861_v48 = vpop.permute.xlu1 %860 }
 0x2b5   : > { %2382 = vmatmul.mubr.msk.f32.vlgmr.msra.gmra.mrb[8].mxu1 %vm879_vm1, %v861_v48 }
 0x2b6   : > { %2385 = vmatpush3.msra.mxu1 %v852_v47  ;;  %2386 = vmatprep.mubr.msk.f32.mxu1 %vm2744_vm0, %v2745_v41 }
 0x2b7   : > { %2389 = vmatprep.subr.mxu1 %v2745_v41 }
 0x309   : > { %v950_v49 = vpop.f32.mrb[2].mxu1 }
 0x30a   : > { %v2368_v50 = vpop.f32.mrb[3].mxu1  ;;  %v1176_v51 = vsel %vm879_vm1, %v950_v49, -inf }
 0x30b   : > { %1177 = vmax.xlane.f32.xlu1 %v1176_v51 }
 0x37c   : > { %v1024_v52 = vpop.f32.mrb[4].mxu1 }
 0x37d   : > { %v2373_v53 = vpop.f32.mrb[5].mxu1  ;;  %v1179_v54 = vsel %vm879_vm1, %v1024_v52, -inf }
 0x37e   : > { %1180 = vmax.xlane.f32.xlu0 %v1179_v54 }
 0x380   : > { %v1098_v55 = vpop.f32.mrb[6].mxu1 }
 0x381   : > { %v2378_v56 = vpop.f32.mrb[7].mxu1  ;;  %v1182_v57 = vsel %vm879_vm1, %v1098_v55, -inf }
 0x382   : > { %1183 = vmax.xlane.f32.xlu1 %v1182_v57  ;;  %v2141_v56 = vld [vmem:[%s3381_s10] ss:$0 sm:$0xff] }
 0x388   : > { %v1172_v58 = vpop.f32.mrb[8].mxu1 }
 0x389   : > { %v2383_v59 = vpop.f32.mrb[9].mxu1  ;;  %v1185_v60 = vsel %vm879_vm1, %v1172_v58, -inf }
 0x38a   : > { %1186 = vmax.xlane.f32.xlu1 %v1185_v60 }
 0x398   : > { %v1178_v61 = vpop.xlane.xlu1 %1177 }
 0x399   : > { %v1188_v62 = vsub.f32 %v950_v49, %v1178_v61  ;;  %v1860_v61 = vld [vmem:[%s3384_s13 + $0x8] sm:$0xff] }
 0x39b   : > { %v1192_v63 = vmul.f32 1.442695, %v1188_v62  ;;  %v1861_v62 = vld [vmem:[%s3384_s13 + $0x10] sm:$0xff] }
 0x39d   : > { %2661 = vpow2.f32 %v1192_v63 }
 0x3a7   : > { %v2662_v1 = vpop.eup %2661 }
 0x3a8   : > { %v1200_v2 = vsel %vm879_vm1, %v2662_v1, 0.0 }
 0x3a9   : > { %1201 = vadd.xlane.f32.xlu0 %v1200_v2 }
 0x40b   : > { %v1181_v3 = vpop.xlane.xlu0 %1180 }
 0x40c   : > { %v1189_v5 = vsub.f32 %v1024_v52, %v1181_v3 }
 0x40e   : > { %v1194_v6 = vmul.f32 1.442695, %v1189_v5 }
 0x40f   : > { %v1184_v7 = vpop.xlane.xlu1 %1183 }
 0x410   : > { %2663 = vpow2.f32 %v1194_v6  ;;  %v1190_v8 = vsub.f32 %v1098_v55, %v1184_v7  ;;  %v1863_v7 = vld [vmem:[%s3384_s13 + $0x20] sm:$0xff] }
 0x412   : > { %v1196_v9 = vmul.f32 1.442695, %v1190_v8  ;;  %v1864_v8 = vld [vmem:[%s3384_s13 + $0x28] sm:$0xff] }
 0x414   : > { %2665 = vpow2.f32 %v1196_v9  ;;  %v2573_v9 = vpack.c.bf16 %v1864_v8, %v1863_v7 }
 0x417   : > { %v1187_v15 = vpop.xlane.xlu1 %1186 }
 0x418   : > { %v1191_v16 = vsub.f32 %v1172_v58, %v1187_v15  ;;  %v1869_v15 = vld [vmem:[%s3384_s13 + $0x50] sm:$0xff] }
 0x41a   : > { %v2664_v10 = vpop.eup %2663  ;;  %v1198_v17 = vmul.f32 1.442695, %v1191_v16 }
 0x41b   : > { %v1203_v11 = vsel %vm879_vm1, %v2664_v10, 0.0 }
 0x41c   : > { %1204 = vadd.xlane.f32.xlu1 %v1203_v11  ;;  %v1866_v11 = vld [vmem:[%s3384_s13 + $0x38] sm:$0xff] }
 0x41e   : > { %v2666_v12 = vpop.eup %2665 }
 0x41f   : > { %v1206_v13 = vsel %vm879_vm1, %v2666_v12, 0.0 }
 0x420   : > { %1207 = vadd.xlane.f32.xlu0 %v1206_v13  ;;  %v1867_v13 = vld [vmem:[%s3384_s13 + $0x40] sm:$0xff] }
 0x42d   : > { %873 = vrot.lane.b32.xlu1 %v852_v47, %s2746_s19  ;;  %s2749_s19 = smov [#allocation2]  }
 0x436   : > { %v1202_v14 = vpop.xlane.xlu0 %1201  ;;  %870 = vrot.lane.b32.xlu0 %v852_v47, %s2747_s0  ;;  %s537_s0 = sand.u32 1, %s2733_s25  }
 0x437   : > { %2667 = vrcp.f32 %v1202_v14  ;;  %v1868_v14 = vld [vmem:[%s3384_s13 + $0x48] sm:$0xff]  ;;  %s2042_s26 = scalar_lea.sflag [#allocation3], %s537_s0 }
 0x438   : > { %2669 = vpow2.f32 %v1198_v17  ;;  %v2579_v16 = vpack.c.bf16 %v1868_v14, %v1867_v13  ;;  %v1870_v17 = vld [vmem:[%s3384_s13 + $0x58] sm:$0xff] }
 0x441   : > { %v2668_v18 = vpop.eup %2667 }
 0x442   : > { %v1216_v19 = vmul.f32 %v2668_v18, %v2662_v1  ;;  %v2670_v20 = vpop.eup %2669  ;;  %v2582_v18 = vpack.c.bf16 %v1870_v17, %v1869_v15 }
 0x443   : > { %v1209_v21 = vsel %vm879_vm1, %v2670_v20, 0.0 }
 0x444   : > { %2387 = vmatmul.mubr.msk.f32.vlgmr.msra.gmra.mrb[10].mxu1 %vm879_vm1, %v1216_v19  ;;  %v1871_v19 = vld [vmem:[%s3384_s13 + $0x60] sm:$0xff] }
 0x445   : > { %2391 = vmatprep.mubr.msk.f32.mxu1 %vm2744_vm0, %v2745_v41 }
 0x451   : > { %1210 = vadd.xlane.f32.xlu1 %v1209_v21 }
 0x462   : > { %876 = vrot.lane.b32.xlu1 %v852_v47, %s2748_s20  ;;  %s2118_s20 = sshll.u32 %s537_s0, 3 }
 0x463   : > { %s539_s29 = scalar_lea.vmem [#allocation2], %s2118_s20  ;;  %s2683_s20 = sshll.u32 %s2749_s19, 4  ;;  %s2684_s20 = int_to_ptr.vmem [resolvable:$false] %s2683_s20 }
 0x464   : > { %s2055_s30 = sshll.u32 %s539_s29, 4  ;;  %s2685_s24 = scalar_lea.vmem %s2684_s20, 256  ;;  %s3331_s30 = int_to_ptr.vmem [resolvable:$true] %s2055_s30 }
 0x465   : > { %s2679_s28 = scalar_lea.vmem %s3331_s30, 128  ;;  %p2686_p0 = scmp.lt.s32.totalorder %s3331_s30, %s2684_s20 }
 0x466   : > { %p2680_p11 = scmp.ne.s32.totalorder %s3331_s30, %s2679_s28  ;;  %p2687_p1 = scmp.lt.s32.totalorder %s2685_s24, %s2679_s28 }
 0x468   : > { %p2681_p12 = pnand %p2680_p11, %p2878_p5  ;;  %p2688_p2 = por %p2687_p1, %p2686_p0 }
 0x46a   : > { %p2682_p13 = pneg %p2681_p12 }
 0x46c   : > { %p2689_p3 = pnand %p2688_p2, %p2682_p13 }
 0x4a9   : > { %v1205_v23 = vpop.xlane.xlu1 %1204 }
 0x4aa   : > { %2671 = vrcp.f32 %v1205_v23  ;;  %v1874_v23 = vld [vmem:[%s3384_s13 + $0x78] sm:$0xff] }
 0x4ad   : > { %v1208_v24 = vpop.xlane.xlu0 %1207  ;;  %v874_v28 = vpop.permute.xlu1 %873 }
 0x4ae   : > { %2673 = vrcp.f32 %v1208_v24  ;;  %v2588_v24 = vpack.c.bf16 %v1874_v23, %v1873_v22 }
 0x4b1   : > { %v871_v25 = vpop.permute.xlu0 %870 }
 0x4b2   : > { %2390 = vmatpush3.msra.mxu1 %v871_v25  ;;  %v1953_v25 = vld [vmem:[%s3386_s15] sm:$0xff] }
 0x4b3   : > { %2394 = vmatprep.subr.mxu1 %v2745_v41 }
 0x4b4   : > { %v2672_v26 = vpop.eup %2671 }
 0x4b5   : > { %v1217_v27 = vmul.f32 %v2672_v26, %v2664_v10  ;;  %v1865_v10 = vld [vmem:[%s3384_s13 + $0x30] sm:$0xff]  ;;  %v1954_v26 = vld [vmem:[%s3386_s15 + $0x8] sm:$0xff] }
 0x4b7   : > { %2392 = vmatmul.mubr.msk.f32.vlgmr.msra.gmra.mrb[12].mxu1 %vm879_vm1, %v1217_v27  ;;  %v1955_v27 = vld [vmem:[%s3386_s15 + $0x10] sm:$0xff] }
 0x4b8   : > { %v2674_v29 = vpop.eup %2673  ;;  %2395 = vmatpush3.msra.mxu1 %v874_v28  ;;  %2396 = vmatprep.mubr.msk.f32.mxu1 %vm2744_vm0, %v2745_v41  ;;  %v2591_v28 = vpack.c.bf16 %v1954_v26, %v1953_v25 }
 0x4b9   : > { %v1218_v30 = vmul.f32 %v2674_v29, %v2666_v12  ;;  %2399 = vmatprep.subr.mxu1 %v2745_v41  ;;  %v2576_v12 = vpack.c.bf16 %v1866_v11, %v1865_v10  ;;  %v1956_v29 = vld [vmem:[%s3386_s15 + $0x18] sm:$0xff] }
 0x4bb   : > { %2397 = vmatmul.mubr.msk.f32.vlgmr.msra.gmra.mrb[14].mxu1 %vm879_vm1, %v1218_v30  ;;  %v2594_v30 = vpack.c.bf16 %v1956_v29, %v1955_v27 }
 0x4bc   : > { %2401 = vmatprep.mubr.msk.f32.mxu1 %vm2744_vm0, %v2745_v41 }
 0x4de   : > { %v1211_v31 = vpop.xlane.xlu1 %1210 }
 0x4df   : > { %2675 = vrcp.f32 %v1211_v31  ;;  %v1957_v31 = vld [vmem:[%s3386_s15 + $0x20] sm:$0xff] }
 0x4e2   : > { %v877_v32 = vpop.permute.xlu1 %876 }
 0x4e3   : > { %2400 = vmatpush3.msra.mxu1 %v877_v32  ;;  %v1958_v32 = vld [vmem:[%s3386_s15 + $0x28] sm:$0xff] }
 0x4e4   : > { %2409 = vmatprep.subr.mxu1 %v2745_v41 }
 0x4e9   : > { %v2676_v33 = vpop.eup %2675 }
 0x4ea   : > { %v1219_v34 = vmul.f32 %v2676_v33, %v2670_v20  ;;  %v1872_v20 = vld [vmem:[%s3384_s13 + $0x68] sm:$0xff]  ;;  %v2597_v33 = vpack.c.bf16 %v1958_v32, %v1957_v31 }
 0x4eb   : > { %v2585_v21 = vpack.c.bf16 %v1872_v20, %v1871_v19 }
 0x4ec   : > { %2402 = vmatmul.mubr.msk.f32.vlgmr.msra.gmra.mrb[16].mxu1 %vm879_vm1, %v1219_v34  ;;  %v1959_v34 = vld [vmem:[%s3386_s15 + $0x30] sm:$0xff] }
 0x4ed   : > { %2411 = vmatprep.mubr.msk.f32.mxu1 %vm2744_vm0, %v2745_v41  ;;  %2410 = vmatpush3.msra.mxu1 %v1513_v35  ;;  %v1960_v35 = vld [vmem:[%s3386_s15 + $0x38] sm:$0xff] }
 0x4ee   : > { %2419 = vmatprep.subr.mxu1 %v2745_v41 }
 0x517   : > { %v1289_v37 = vpop.f32.mrb[10].mxu1 }
 0x518   : > { %v2388_v38 = vpop.f32.mrb[11].mxu1  ;;  %2407 = vmatmul.mubr.msk.f32.vlgmr.msra.gmra.mrb[4].mxu0 %vm879_vm1, %v1289_v37  ;;  %v1961_v37 = vld [vmem:[%s3386_s15 + $0x40] sm:$0xff] }
 0x519   : > { %2415 = vmatpush3.msra.mxu0 %v1514_v36  ;;  %2416 = vmatprep.mubr.msk.f32.mxu0 %vm2744_vm0, %v2745_v41  ;;  %v2600_v36 = vpack.c.bf16 %v1960_v35, %v1959_v34  ;;  %v1962_v38 = vld [vmem:[%s3386_s15 + $0x48] sm:$0xff] }
 0x51a   : > { %2566 = vmatprep.subr.bf16.mxu0 %v2743_v4 }
 0x58a   : > { %v1362_v40 = vpop.f32.mrb[12].mxu1 }
 0x58b   : > { %v2393_v42 = vpop.f32.mrb[13].mxu1  ;;  %2412 = vmatmul.mubr.msk.f32.vlgmr.msra.gmra.mrb[18].mxu1 %vm879_vm1, %v1362_v40  ;;  %v1963_v40 = vld [vmem:[%s3386_s15 + $0x50] sm:$0xff] }
 0x58c   : > { %2420 = vmatpush3.msra.mxu1 %v1515_v39  ;;  %2421 = vmatprep.mubr.msk.f32.mxu1 %vm2744_vm0, %v2745_v41  ;;  %v2603_v39 = vpack.c.bf16 %v1962_v38, %v1961_v37  ;;  %v1964_v42 = vld [vmem:[%s3386_s15 + $0x58] sm:$0xff] }
 0x58d   : > { %2590 = vmatprep.subr.bf16.mxu1 %v2743_v4 }
 0x58e   : > { %v1435_v43 = vpop.f32.mrb[14].mxu1 }
 0x58f   : > { %v2398_v44 = vpop.f32.mrb[15].mxu1  ;;  %2417 = vmatmul.mubr.msk.f32.vlgmr.msra.gmra.mrb[6].mxu0 %vm879_vm1, %v1435_v43  ;;  %v2606_v43 = vpack.c.bf16 %v1964_v42, %v1963_v40 }
 0x590   : > { %2456 = vmatprep.mubr.msk.f32.mxu0 %vm2744_vm0, %v2745_v41  ;;  %v1965_v44 = vld [vmem:[%s3386_s15 + $0x60] sm:$0xff] }
 0x5bf   : > { %v1508_v45 = vpop.f32.mrb[16].mxu1 }
 0x5c0   : > { %v2403_v46 = vpop.f32.mrb[17].mxu1  ;;  %2422 = vmatmul.mubr.msk.f32.vlgmr.msra.gmra.mrb[20].mxu1 %vm879_vm1, %v1508_v45  ;;  %v1966_v45 = vld [vmem:[%s3386_s15 + $0x68] sm:$0xff] }
 0x5c1   : > { %2491 = vmatprep.mubr.msk.f32.mxu1 %vm2744_vm0, %v2745_v41  ;;  %v1859_v41 = vld [vmem:[%s3384_s13] sm:$0xff]  ;;  %2592 = vmatpush3.bf16.msra.mxu1 %v2591_v28  ;;  %v2609_v46 = vpack.c.bf16 %v1966_v45, %v1965_v44 }
 0x5c2   : > { %v2567_v63 = vpack.c.bf16 %v1860_v61, %v1859_v41  ;;  %2593 = vmatprep.subr.bf16.mxu1 %v2743_v4  ;;  %v1968_v41 = vld [vmem:[%s3386_s15 + $0x78] sm:$0xff] }
 0x5c4   : > { %2568 = vmatpush3.bf16.msra.mxu0 %v2567_v63 }
 0x5c5   : > { %2569 = vmatprep.subr.bf16.mxu0 %v2743_v4  ;;  %2595 = vmatpush3.bf16.msra.mxu1 %v2594_v30 }
 0x5c6   : > { %2596 = vmatprep.subr.bf16.mxu1 %v2743_v4 }
 0x5c9   : > { %2598 = vmatpush3.bf16.msra.mxu1 %v2597_v33 }
 0x5ca   : > { %2599 = vmatprep.subr.bf16.mxu1 %v2743_v4 }
 0x5cd   : > { %2601 = vmatpush3.bf16.msra.mxu1 %v2600_v36 }
 0x5ce   : > { %2602 = vmatprep.subr.bf16.mxu1 %v2743_v4 }
 0x5d1   : > { %2604 = vmatpush3.bf16.msra.mxu1 %v2603_v39 }
 0x5d2   : > { %2605 = vmatprep.subr.bf16.mxu1 %v2743_v4 }
 0x5d5   : > { %2607 = vmatpush3.bf16.msra.mxu1 %v2606_v43 }
 0x5d6   : > { %2608 = vmatprep.subr.bf16.mxu1 %v2743_v4 }
 0x5d9   : > { %2610 = vmatpush3.bf16.msra.mxu1 %v2609_v46 }
 0x5da   : > { %2611 = vmatprep.subr.bf16.mxu1 %v2743_v4 }
 0x5eb   : > { %v1585_v47 = vpop.f32.mrb[4].mxu0 }
 0x5ec   : > { %v2408_v48 = vpop.f32.mrb[5].mxu0 }
 0x65e   : > { %v1658_v49 = vpop.f32.mrb[18].mxu1 }
 0x65f   : > { %v1808_v50 = vadd.f32 %v1658_v49, %v1585_v47  ;;  %v2413_v51 = vpop.f32.mrb[19].mxu1 }
 0x662   : > { %v1731_v52 = vpop.f32.mrb[6].mxu0 }
 0x663   : > { %v1809_v53 = vadd.f32 %v1808_v50, %v1731_v52  ;;  %v2418_v54 = vpop.f32.mrb[7].mxu0 }
 0x693   : > { %v1804_v55 = vpop.f32.mrb[20].mxu1 }
 0x694   : > { %v1810_v57 = vadd.f32 %v1809_v53, %v1804_v55  ;;  %v2423_v58 = vpop.f32.mrb[21].mxu1  ;;  %v2142_v55 = vld [vmem:[%s3382_s11] ss:$0 sm:$0xff] }
 0x696   : > { %v1818_v59 = vadd.f32 %v2141_v56, %v1810_v57 }
 0x698   : > { %v3187_v60 = vadd.f32 %v1818_v59, %v2893_v0  ;;  %v1862_v0 = vld [vmem:[%s3384_s13 + $0x18] sm:$0xff]  ;;  %v1967_v59 = vld [vmem:[%s3386_s15 + $0x70] sm:$0xff] }
 0x699   : > { %v2570_v1 = vpack.c.bf16 %v1862_v0, %v1861_v62  ;;  %v2612_v61 = vpack.c.bf16 %v1968_v41, %v1967_v59  ;;  %v2145_v62 = vld [vmem:[%s3385_s14] ss:$0 sm:$0xff] }
 0x69a   : > { %1822 = vadd.xlane.f32.xlu0 %v3187_v60 }
 0x69b   : > { %2571 = vmatpush3.bf16.msra.mxu0 %v2570_v1  ;;  %2613 = vmatpush3.bf16.msra.mxu1 %v2612_v61 }
 0x69c   : > { %2572 = vmatprep.subr.bf16.mxu0 %v2743_v4 }
 0x69f   : > { %2574 = vmatpush3.bf16.msra.mxu0 %v2573_v9 }
 0x6a0   : > { %2575 = vmatprep.subr.bf16.mxu0 %v2743_v4 }
 0x6a3   : > { %2577 = vmatpush3.bf16.msra.mxu0 %v2576_v12 }
 0x6a4   : > { %2578 = vmatprep.subr.bf16.mxu0 %v2743_v4 }
 0x6a7   : > { %2580 = vmatpush3.bf16.msra.mxu0 %v2579_v16 }
 0x6a8   : > { %2581 = vmatprep.subr.bf16.mxu0 %v2743_v4 }
 0x6ab   : > { %2583 = vmatpush3.bf16.msra.mxu0 %v2582_v18 }
 0x6ac   : > { %2584 = vmatprep.subr.bf16.mxu0 %v2743_v4 }
 0x6af   : > { %2586 = vmatpush3.bf16.msra.mxu0 %v2585_v21 }
 0x6b0   : > { %2587 = vmatprep.subr.bf16.mxu0 %v2743_v4  ;;  %v2143_v4 = vld [vmem:[%s3383_s12] ss:$0 sm:$0xff] }
 0x6b3   : > { %2589 = vmatpush3.bf16.msra.mxu0 %v2588_v24 }
 0x727   : > { %v1823_v2 = vpop.xlane.xlu0 %1822 }
 0x728   : > { %v3204_v3 = vmul.f32 0.03125, %v1823_v2 }
 0x72a   : > { %v3208_v5 = vsub.f32 %v3187_v60, %v3204_v3  ;;  %v1829_v47 = vmul.f32 %v3204_v3, %v3204_v3  ;;  %v2144_v3 = vld [vmem:[%s3387_s16] ss:$0 sm:$0xff] }
 0x72c   : > { %v1826_v6 = vmul.f32 %v3208_v5, %v3208_v5  ;;  %v1830_v48 = vmul.f32 96.0, %v1829_v47 }
 0x72e   : > { %1827 = vadd.xlane.f32.xlu1 %v1826_v6 }
 0x7bb   : > { %v1828_v49 = vpop.xlane.xlu1 %1827 }
 0x7bc   : > { %v1831_v50 = vsub.f32 %v1828_v49, %v1830_v48 }
 0x7be   : > { %v1832_v51 = vmul.f32 0.03125, %v1831_v50 }
 0x7c0   : > { %v1833_v52 = vmax.f32 %v1832_v51, 0.0 }
 0x7c2   : > { %v1834_v53 = vadd.f32 1e-05, %v1833_v52 }
 0x7c4   : > { %2677 = vrsqrt.f32 %v1834_v53 }
 0x7ce   : > { %v2678_v54 = vpop.eup %2677 }
 0x7cf   : > { %v1836_v56 = vmul.f32 %v2678_v54, %v3208_v5  ;;  %v1858_v5 = vadd.f32 %v2144_v3, %v3187_v60 }
 0x7d1   : > { %v1843_v57 = vmul.f32 %v2142_v55, %v1836_v56 }
 0x7d3   : > { %v1850_v58 = vadd.f32 %v2143_v4, %v1843_v57 }
 0x7d5   : > { %2457 = vmatmul.mubr.f32.vlgmr.msra.gmra.mrb[8].mxu0 %v1850_v58 }
 0x8a8   : > { %v1948_v63 = vpop.f32.mrb[8].mxu0 }
 0x8a9   : > { %v1949_v0 = vadd.f32 %v2145_v62, %v1948_v63  ;;  %v2458_v1 = vpop.f32.mrb[9].mxu0 }
 0x8ab   : > { %v1952_v2 = vmax.f32 %v1949_v0, 0.0 }
 0x8ad   : > { %2492 = vmatmul.mubr.f32.vlgmr.msra.gmra.mrb[22].mxu1 %v1952_v2 }
 0x980   : > { %v2035_v6 = vpop.f32.mrb[22].mxu1 }
 0x981   : > { %v2039_v7 = vadd.f32 %v2035_v6, %v1858_v5  ;;  %v2493_v8 = vpop.f32.mrb[23].mxu1 }
 0x983   : > { %2040 = vst [vmem:[%s539_s29] sm:$0xff] %v2039_v7 }
 0x984   : > { %2692 = shalt.err (!%p2689_p3)
}
 0x985   : > { %s2693_s0 = scalar_lea.hbm %s3329_s22, 128  ;;  %s2697_s29 = scalar_lea.hbm %s3388_s17, 256 }
 0x986   : > { %p2694_p4 = scmp.ne.s32.totalorder %s3329_s22, %s2693_s0  ;;  %p2698_p9 = scmp.lt.u32.totalorder %s3329_s22, %s3388_s17 }
 0x987   : > { %p2699_p10 = scmp.lt.u32.totalorder %s2697_s29, %s2693_s0  ;;  %p2701_p12 = scmp.lt.u32.totalorder %s2693_s0, %s3329_s22 }
 0x988   : > { %p2695_p7 = pnand %p2694_p4, %p2878_p5 }
 0x989   : > { %p2700_p11 = por %p2699_p10, %p2698_p9 }
 0x98a   : > { %p2696_p8 = pneg %p2695_p7 }
 0x98b   : > { %p2702_p13 = por %p2701_p12, %p2700_p11 }
 0x98d   : > { %p2703_p0 = pnand %p2702_p13, %p2696_p8 }
 0x98f   : > { %2706 = shalt.err (!%p2703_p0)
}
 0x990   : > { %2614 = dma.vmem_to_hbm [thread:$0]  (%p2878_p5), %s3331_s30, 128, %s3329_s22, %s2042_s26  }
 0x991 PF: > { %s3407_s28 = sld [smem:[#allocation7_spill]]  ;;  %s3408_s19 = sld [smem:[#allocation5_spill]] }
 0x997   : > { %p2620_p1 = scmp.ge.s32.totalorder %s3407_s28, 2  ;;  %s2067_s24 = sand.u32 1, %s3408_s19  }
 0x998   : > { %s2068_s27 = scalar_lea.sflag [#allocation3], %s2067_s24 }
 0x999   : > { %p2617_p2 = pnand %p2620_p1, %p2882_p6 }
 0x99b   : > { %2724 = dma.done.wait (!%p2617_p2), %s2068_s27, 128  }
 0x99c   : > { %2726 = vsyncadd (!%p2617_p2), %s2068_s27, 4294967168  ;;  %s3410_s27 = sld [smem:[#allocation8_spill]]  ;;  %s3411_s0 = sld [smem:[#allocation6_spill]] }
 0x99d   : > { %s3412_s26 = sld [smem:[#allocation9_spill]]  ;;  %s3413_s24 = smov %s2733_s25 }
 0x9a2   : > { %p27_p3 = scmp.ge.s32.totalorder %s3410_s27, 4   ;;  %s3414_s25 = smov %s3411_s0 }
 0x9a4   :  { %29 = sbr.rel (!%p27_p3) target bundleno = 6 (0x6), region = 123 }
 0x9ab   :  { %2073 = vsyncpa [#allocation3], 1 }
 0x9ac   :  { %2075 = vsyncpa [#allocation3 + $0x1], 1 }

</bundles_post_ra>
